<compile_context>
chip_gen: v7x
topology: tpu7x:2x2x1
jax: 0.10.0
libtpu: 0.0.40
codegen_flags: <defaults>
</compile_context>

<pallas_src>
import jax
import jax.numpy as jnp
from jax.experimental import pallas as pl
from jax.experimental.pallas import tpu as pltpu


def _make_gat_kernel(G, N, HC, negative_slope=0.2, eps=1e-5):
    """Lane-packed GATv2 kernel: G graphs per grid step, packed along lanes."""

    def kernel(x_ref, g_ref, b_ref, wlr_ref, blr_ref, att_ref, bias_ref,
               adjb_ref, scat_ref, ee_ref, o_ref):
        D = x_ref.shape[-1]
        GHC = G * HC

        # ---- LayerNorm (eps = 1e-5, PyTorch default) over all G*N stacked rows ----
        x = x_ref[...].reshape(G * N, D)
        mu = jnp.mean(x, axis=-1, keepdims=True)
        xc = x - mu
        var = jnp.mean(xc * xc, axis=-1, keepdims=True)
        xn = (xc * jax.lax.rsqrt(var + eps)) * g_ref[...] + b_ref[...]

        # ---- fused lin_l | lin_r projection: a single MXU matmul over G*N rows ----
        xlr = jnp.dot(xn, wlr_ref[...], preferred_element_type=jnp.float32) + blr_ref[...]
        xl_s = xlr[:, :HC].reshape(G, N, HC)      # source-side features (the messages)
        xr_s = xlr[:, HC:].reshape(G, N, HC)      # target-side features
        # Repack graphs into the lane dimension -> lane-dense [N, G*HC] tensors.
        xl = jnp.concatenate([xl_s[g] for g in range(G)], axis=-1)
        xr = jnp.concatenate([xr_s[g] for g in range(G)], axis=-1)

        # ---- densify projected edge features via one 0/1 scatter-matrix matmul ----
        ef = jnp.dot(scat_ref[...], ee_ref[0],
                     preferred_element_type=jnp.float32).reshape(N, N, GHC)

        # ---- attention scores at full 128-lane width: [N_t, N_s, G*HC] ----
        s = xr[:, None, :] + xl[None, :, :] + ef
        s = jnp.where(s > 0, s, negative_slope * s)              # LeakyReLU(0.2)

        # per-(graph, head) <att, s> reduction as one [N*N, GHC] @ [GHC, GHC] matmul;
        # lane l of the result carries its (graph, head) logit repeated across lanes.
        logits = jnp.dot(s.reshape(N * N, GHC), att_ref[...],
                         preferred_element_type=jnp.float32).reshape(N, N, GHC)
        logits = logits + adjb_ref[...]                          # 0 / -1e30 adjacency bias

        # ---- per-target softmax over source nodes (sublane axis) ----
        m = jnp.max(logits, axis=1, keepdims=True)
        e = jnp.exp(logits - m)                                  # masked entries -> 0
        denom = jnp.sum(e, axis=1)                               # [N, GHC]
        # TODO(synk): attention-coefficient dropout omitted (eval mode == identity).

        # ---- aggregation without materializing alpha; normalize at output width ----
        agg = jnp.sum(e * xl[None, :, :], axis=1)                # [N, GHC]
        out = agg * pl.reciprocal(denom, approx=True) + bias_ref[...]
        o_ref[...] = out[None]

    return kernel


def _graph_structure(edge_index, N, E, GHC):
    """Batch-invariant structures (edge_index only): 0/1 scatter matrix that densifies
    projected edge rows into the [N, N] slab (row = dst*N + src; rows E..E+N-1 are the
    self loops), plus the pre-biased adjacency broadcast to the logits lane layout.
    Assumes unique (src, dst) pairs and no pre-existing self loops."""
    src, dst = edge_index[0], edge_index[1]
    diag = jnp.arange(N, dtype=src.dtype)
    flat = jnp.concatenate([dst * N + src, diag * N + diag])             # [E+N]
    scat = jnp.zeros((N * N, E + N), jnp.float32).at[flat, jnp.arange(E + N)].set(1.0)
    adj = jnp.full((N * N,), -1e30, jnp.float32).at[flat].set(0.0)
    adjb = jnp.broadcast_to(adj.reshape(N, N, 1), (N, N, GHC))
    return scat, adjb


def _project_edges(edge_index, edge_attr, w_e, N):
    """lin_edge over the real edges plus GATv2's mean-attr self loops (lin_edge has no
    bias, so mean-then-project == project-then-mean).  Returns [E+N, HC]."""
    dst = edge_index[1]
    D = edge_attr.shape[-1]
    seg = jnp.zeros((N, D), edge_attr.dtype).at[dst].add(edge_attr)
    cnt = jnp.zeros((N,), edge_attr.dtype).at[dst].add(1.0)
    loop = seg / jnp.maximum(cnt, 1.0)[:, None]
    rows = jnp.concatenate([edge_attr, loop], axis=0)                    # [E+N, D]
    return rows @ w_e                                                    # [E+N, HC]


def gat_layer_forward(params, x, edge_index, edge_attr, *, graphs_per_block=4):
    """Per-generation tuning: v5e/v6e (1 TensorCore) -> graphs_per_block = B (one grid
    step); v7x (2 TCs) -> keep >= 2 grid steps and mind the 64 MiB VMEM when scaling."""
    squeeze = x.ndim == 2
    if squeeze:                        # single-graph call, same semantics as the module
        x = x[None]
        edge_attr = edge_attr[None]
    B, N, D = x.shape
    H = params["num_heads"]
    C = D // H
    HC = H * C
    G = min(graphs_per_block, B)
    assert B % G == 0, "batch must be divisible by graphs_per_block"
    GHC = G * HC
    E = edge_index.shape[1]
    EN = E + N

    # Batch-invariant graph structure; constant index_maps keep these resident in VMEM.
    scat, adjb = _graph_structure(edge_index, N, E, GHC)

    # Projected edge rows per graph, lane-packed: ee_packed[blk, e, g*HC + hc].
    ee = jax.vmap(lambda ea: _project_edges(edge_index, ea, params["w_e"], N))(edge_attr)
    ee_packed = (ee.reshape(B // G, G, EN, HC)
                   .transpose(0, 2, 1, 3)
                   .reshape(B // G, EN, GHC))

    # Fused lin_l | lin_r weights / biases.
    w_lr = jnp.concatenate([params["w_l"], params["w_r"]], axis=1)       # [D, 2*HC]
    b_lr = jnp.concatenate([params["b_l"], params["b_r"]], axis=1)       # [1, 2*HC]

    # Block-diagonal att matrix over (graph, head) lane blocks of width C.
    head = jnp.arange(GHC) // C
    att_g = jnp.tile(params["att"][0], (G,))                             # [GHC]
    att_bd = jnp.where(head[:, None] == head[None, :],
                       att_g[:, None], 0.0).astype(jnp.float32)          # [GHC, GHC]

    bias_packed = jnp.tile(params["bias"], (1, G))                       # [1, GHC]

    fixed2 = lambda b: (0, 0)
    fixed3 = lambda b: (0, 0, 0)
    perblk3 = lambda b: (b, 0, 0)

    out = pl.pallas_call(
        _make_gat_kernel(G, N, HC),
        out_shape=jax.ShapeDtypeStruct((B // G, N, GHC), jnp.float32),
        grid_spec=pltpu.PrefetchScalarGridSpec(
            num_scalar_prefetch=0,
            grid=(B // G,),
            in_specs=[
                pl.BlockSpec((G, N, D), perblk3),       # x
                pl.BlockSpec((1, D), fixed2),           # ln gamma
                pl.BlockSpec((1, D), fixed2),           # ln beta
                pl.BlockSpec((D, 2 * HC), fixed2),      # [w_l | w_r]
                pl.BlockSpec((1, 2 * HC), fixed2),      # [b_l | b_r]
                pl.BlockSpec((GHC, GHC), fixed2),       # block-diagonal att (resident)
                pl.BlockSpec((1, GHC), fixed2),         # output bias, tiled over G
                pl.BlockSpec((N, N, GHC), fixed3),      # adjacency bias (resident)
                pl.BlockSpec((N * N, EN), fixed2),      # 0/1 edge scatter matrix (resident)
                pl.BlockSpec((1, EN, GHC), perblk3),    # projected edge rows (lane-packed)
            ],
            out_specs=pl.BlockSpec((1, N, GHC), perblk3),
        ),
        compiler_params=pltpu.CompilerParams(dimension_semantics=("parallel",)),
    )(x, params["ln_gamma"], params["ln_beta"], w_lr, b_lr,
      att_bd, bias_packed, adjb, scat, ee_packed)

    # Unpack lanes -> (B, N, HC).
    out = out.reshape(B // G, N, G, HC).transpose(0, 2, 1, 3).reshape(B, N, HC)
    return out[0] if squeeze else out


def _reference_forward(params, x, edge_index, edge_attr):
    """Pure-JAX reference of the same math (single graph, per-head loop)."""
    N, D = x.shape
    H = params["num_heads"]
    C = D // H
    src, dst = edge_index[0], edge_index[1]

    seg_sum = jnp.zeros((N, D), edge_attr.dtype).at[dst].add(edge_attr)
    counts = jnp.zeros((N,), edge_attr.dtype).at[dst].add(1.0)
    loop_attr = seg_sum / jnp.maximum(counts, 1.0)[:, None]
    adj = jnp.zeros((N, N), jnp.float32).at[dst, src].set(1.0)
    ef = jnp.zeros((N, N, D), edge_attr.dtype).at[dst, src].set(edge_attr)
    diag = jnp.arange(N)
    adj = adj.at[diag, diag].set(1.0)
    ef = ef.at[diag, diag].set(loop_attr)
    ef_flat = ef.reshape(N * N, D)

    mu = x.mean(-1, keepdims=True)
    xc = x - mu
    var = (xc * xc).mean(-1, keepdims=True)
    xn = xc / jnp.sqrt(var + 1e-5) * params["ln_gamma"] + params["ln_beta"]

    xl = xn @ params["w_l"] + params["b_l"]
    xr = xn @ params["w_r"] + params["b_r"]
    ee = ef_flat @ params["w_e"]

    outs = []
    for h in range(H):
        sl = slice(h * C, (h + 1) * C)
        s = xr[:, None, sl] + xl[None, :, sl] + ee[:, sl].reshape(N, N, C)
        s = jnp.where(s > 0, s, 0.2 * s)
        logits = (s * params["att"][0, sl][None, None, :]).sum(-1)
        logits = jnp.where(adj > 0, logits, -1e30)
        e = jnp.where(adj > 0, jnp.exp(logits - logits.max(-1, keepdims=True)), 0.0)
        alpha = e / e.sum(-1, keepdims=True)
        outs.append(alpha @ xl[:, sl])
    return jnp.concatenate(outs, -1) + params["bias"]


if __name__ == "__main__":
    N, D, H = 16, 32, 4        # graph_size=16, dim=32, num_heads=4
    HC = D                     # heads * (dim // heads)
    B = 8                      # batch of independent graphs
    key = jax.random.PRNGKey(0)
    ks = jax.random.split(key, 9)
    scale = 0.2

    params = {
        "num_heads": H,
        "ln_gamma": jnp.ones((1, D), jnp.float32),
        "ln_beta": jnp.zeros((1, D), jnp.float32),
        "w_l": scale * jax.random.normal(ks[0], (D, HC), jnp.float32),   # lin_l
        "b_l": scale * jax.random.normal(ks[1], (1, HC), jnp.float32),
        "w_r": scale * jax.random.normal(ks[2], (D, HC), jnp.float32),   # lin_r
        "b_r": scale * jax.random.normal(ks[3], (1, HC), jnp.float32),
        "w_e": scale * jax.random.normal(ks[4], (D, HC), jnp.float32),   # lin_edge (no bias)
        "att": scale * jax.random.normal(ks[5], (1, HC), jnp.float32),   # att [1, H, C] flat
        "bias": scale * jax.random.normal(ks[6], (1, HC), jnp.float32),  # output bias
    }
    x = jax.random.normal(ks[7], (B, N, D), jnp.float32)

    # Edge list: ring (i <- i+1) + skip (i <- i+5). Unique pairs, no self loops.
    dst = jnp.concatenate([jnp.arange(N), jnp.arange(N)]).astype(jnp.int32)
    src = jnp.concatenate([(jnp.arange(N) + 1) % N, (jnp.arange(N) + 5) % N]).astype(jnp.int32)
    edge_index = jnp.stack([src, dst], axis=0)
    E = edge_index.shape[1]
    edge_attr = 0.5 * jax.random.normal(ks[8], (B, E, D), jnp.float32)

    # graphs_per_block=4 -> G*HC = 128 lanes, 2 grid steps (both v7x TensorCores busy;
    # on v5e/v6e graphs_per_block=B would fold the batch into a single grid step).
    out = jax.block_until_ready(
        gat_layer_forward(params, x, edge_index, edge_attr, graphs_per_block=4))
    ref = jax.vmap(lambda xg, eg: _reference_forward(params, xg, edge_index, eg))(x, edge_attr)

    assert out.shape == (B, N, D), out.shape
    err = float(jnp.max(jnp.abs(out - ref)))
    assert jnp.allclose(out, ref, atol=2e-3, rtol=2e-3), err
    print("KERNEL_OK")
</pallas_src>

<mosaic_0001>
module attributes {stable_mosaic.version = 11 : i64} {
  func.func @kernel(%arg0: i32, %arg1: memref<4x16x32xf32, #tpu.memory_space<vmem>>, %arg2: memref<1x32xf32, #tpu.memory_space<vmem>>, %arg3: memref<1x32xf32, #tpu.memory_space<vmem>>, %arg4: memref<32x64xf32, #tpu.memory_space<vmem>>, %arg5: memref<1x64xf32, #tpu.memory_space<vmem>>, %arg6: memref<128x128xf32, #tpu.memory_space<vmem>>, %arg7: memref<1x128xf32, #tpu.memory_space<vmem>>, %arg8: memref<16x16x128xf32, #tpu.memory_space<vmem>>, %arg9: memref<256x48xf32, #tpu.memory_space<vmem>>, %arg10: memref<1x48x128xf32, #tpu.memory_space<vmem>>, %arg11: memref<1x16x128xf32, #tpu.memory_space<vmem>>) attributes {dimension_semantics = [#tpu.dimension_semantics<parallel>], iteration_bounds = array<i64: 2>, scalar_prefetch = 0 : i64, scratch_operands = 0 : i64, tpu.core_type = #tpu.core_type<tc>, window_params = [{transform_indices = @transform_0, window_bounds = array<i64: 4, 16, 32>}, {pipeline_mode = #tpu.pipeline_mode<synchronous>, transform_indices = @transform_1, window_bounds = array<i64: 1, 32>}, {pipeline_mode = #tpu.pipeline_mode<synchronous>, transform_indices = @transform_2, window_bounds = array<i64: 1, 32>}, {pipeline_mode = #tpu.pipeline_mode<synchronous>, transform_indices = @transform_3, window_bounds = array<i64: 32, 64>}, {pipeline_mode = #tpu.pipeline_mode<synchronous>, transform_indices = @transform_4, window_bounds = array<i64: 1, 64>}, {pipeline_mode = #tpu.pipeline_mode<synchronous>, transform_indices = @transform_5, window_bounds = array<i64: 128, 128>}, {pipeline_mode = #tpu.pipeline_mode<synchronous>, transform_indices = @transform_6, window_bounds = array<i64: 1, 128>}, {pipeline_mode = #tpu.pipeline_mode<synchronous>, transform_indices = @transform_7, window_bounds = array<i64: 16, 16, 128>}, {pipeline_mode = #tpu.pipeline_mode<synchronous>, transform_indices = @transform_8, window_bounds = array<i64: 256, 48>}, {transform_indices = @transform_9, window_bounds = array<i64: 1, 48, 128>}, {transform_indices = @transform_10, window_bounds = array<i64: 1, 16, 128>}]} {
    %c0 = arith.constant 0 : index
    %c0_0 = arith.constant 0 : index
    %c0_1 = arith.constant 0 : index
    %0 = vector.load %arg1[%c0, %c0_0, %c0_1] : memref<4x16x32xf32, #tpu.memory_space<vmem>>, vector<4x16x32xf32>
    %1 = vector.shape_cast %0 : vector<4x16x32xf32> to vector<64x32xf32>
    %cst = arith.constant dense<0.000000e+00> : vector<64xf32>
    %2 = vector.multi_reduction <add>, %1, %cst [1] : vector<64x32xf32> to vector<64xf32>
    %3 = vector.shape_cast %2 : vector<64xf32> to vector<64x1xf32>
    %cst_2 = arith.constant 3.200000e+01 : f32
    %4 = vector.broadcast %cst_2 : f32 to vector<64x1xf32>
    %5 = arith.divf %3, %4 : vector<64x1xf32>
    %6 = vector.broadcast %5 : vector<64x1xf32> to vector<64x32xf32>
    %7 = arith.subf %1, %6 : vector<64x32xf32>
    %8 = arith.mulf %7, %7 : vector<64x32xf32>
    %cst_3 = arith.constant dense<0.000000e+00> : vector<64xf32>
    %9 = vector.multi_reduction <add>, %8, %cst_3 [1] : vector<64x32xf32> to vector<64xf32>
    %10 = vector.shape_cast %9 : vector<64xf32> to vector<64x1xf32>
    %cst_4 = arith.constant 3.200000e+01 : f32
    %11 = vector.broadcast %cst_4 : f32 to vector<64x1xf32>
    %12 = arith.divf %10, %11 : vector<64x1xf32>
    %cst_5 = arith.constant 9.99999974E-6 : f32
    %13 = vector.broadcast %cst_5 : f32 to vector<64x1xf32>
    %14 = arith.addf %12, %13 : vector<64x1xf32>
    %15 = math.rsqrt %14 : vector<64x1xf32>
    %16 = vector.broadcast %15 : vector<64x1xf32> to vector<64x32xf32>
    %17 = arith.mulf %7, %16 : vector<64x32xf32>
    %c0_6 = arith.constant 0 : index
    %c0_7 = arith.constant 0 : index
    %18 = vector.load %arg2[%c0_6, %c0_7] : memref<1x32xf32, #tpu.memory_space<vmem>>, vector<1x32xf32>
    %19 = vector.broadcast %18 : vector<1x32xf32> to vector<64x32xf32>
    %20 = arith.mulf %17, %19 : vector<64x32xf32>
    %c0_8 = arith.constant 0 : index
    %c0_9 = arith.constant 0 : index
    %21 = vector.load %arg3[%c0_8, %c0_9] : memref<1x32xf32, #tpu.memory_space<vmem>>, vector<1x32xf32>
    %22 = vector.broadcast %21 : vector<1x32xf32> to vector<64x32xf32>
    %23 = arith.addf %20, %22 : vector<64x32xf32>
    %c0_10 = arith.constant 0 : index
    %c0_11 = arith.constant 0 : index
    %24 = vector.load %arg4[%c0_10, %c0_11] : memref<32x64xf32, #tpu.memory_space<vmem>>, vector<32x64xf32>
    %cst_12 = arith.constant dense<0.000000e+00> : vector<64x64xf32>
    %25 = tpu.matmul %23, %24, %cst_12 {dimension_numbers = #tpu.dot_dimension_numbers<[1], [0], [0], [1], [0, 0, 1, 1], [], []>} : vector<64x32xf32>, vector<32x64xf32>, vector<64x64xf32> -> vector<64x64xf32>
    %c0_13 = arith.constant 0 : index
    %c0_14 = arith.constant 0 : index
    %26 = vector.load %arg5[%c0_13, %c0_14] : memref<1x64xf32, #tpu.memory_space<vmem>>, vector<1x64xf32>
    %27 = vector.broadcast %26 : vector<1x64xf32> to vector<64x64xf32>
    %28 = arith.addf %25, %27 : vector<64x64xf32>
    %29 = vector.extract_strided_slice %28 {offsets = [0, 0], sizes = [64, 32], strides = [1, 1]} : vector<64x64xf32> to vector<64x32xf32>
    %30 = vector.shape_cast %29 : vector<64x32xf32> to vector<4x16x32xf32>
    %31 = vector.extract_strided_slice %28 {offsets = [0, 32], sizes = [64, 32], strides = [1, 1]} : vector<64x64xf32> to vector<64x32xf32>
    %32 = vector.shape_cast %31 : vector<64x32xf32> to vector<4x16x32xf32>
    %33 = vector.extract_strided_slice %30 {offsets = [0, 0, 0], sizes = [1, 16, 32], strides = [1, 1, 1]} : vector<4x16x32xf32> to vector<1x16x32xf32>
    %34 = vector.shape_cast %33 : vector<1x16x32xf32> to vector<16x32xf32>
    %35 = vector.extract_strided_slice %30 {offsets = [1, 0, 0], sizes = [1, 16, 32], strides = [1, 1, 1]} : vector<4x16x32xf32> to vector<1x16x32xf32>
    %36 = vector.shape_cast %35 : vector<1x16x32xf32> to vector<16x32xf32>
    %37 = vector.extract_strided_slice %30 {offsets = [2, 0, 0], sizes = [1, 16, 32], strides = [1, 1, 1]} : vector<4x16x32xf32> to vector<1x16x32xf32>
    %38 = vector.shape_cast %37 : vector<1x16x32xf32> to vector<16x32xf32>
    %39 = vector.extract_strided_slice %30 {offsets = [3, 0, 0], sizes = [1, 16, 32], strides = [1, 1, 1]} : vector<4x16x32xf32> to vector<1x16x32xf32>
    %40 = vector.shape_cast %39 : vector<1x16x32xf32> to vector<16x32xf32>
    %41 = tpu.concatenate %34, %36, %38, %40 in 1 : vector<16x32xf32>, vector<16x32xf32>, vector<16x32xf32>, vector<16x32xf32> -> vector<16x128xf32>
    %42 = vector.extract_strided_slice %32 {offsets = [0, 0, 0], sizes = [1, 16, 32], strides = [1, 1, 1]} : vector<4x16x32xf32> to vector<1x16x32xf32>
    %43 = vector.shape_cast %42 : vector<1x16x32xf32> to vector<16x32xf32>
    %44 = vector.extract_strided_slice %32 {offsets = [1, 0, 0], sizes = [1, 16, 32], strides = [1, 1, 1]} : vector<4x16x32xf32> to vector<1x16x32xf32>
    %45 = vector.shape_cast %44 : vector<1x16x32xf32> to vector<16x32xf32>
    %46 = vector.extract_strided_slice %32 {offsets = [2, 0, 0], sizes = [1, 16, 32], strides = [1, 1, 1]} : vector<4x16x32xf32> to vector<1x16x32xf32>
    %47 = vector.shape_cast %46 : vector<1x16x32xf32> to vector<16x32xf32>
    %48 = vector.extract_strided_slice %32 {offsets = [3, 0, 0], sizes = [1, 16, 32], strides = [1, 1, 1]} : vector<4x16x32xf32> to vector<1x16x32xf32>
    %49 = vector.shape_cast %48 : vector<1x16x32xf32> to vector<16x32xf32>
    %50 = tpu.concatenate %43, %45, %47, %49 in 1 : vector<16x32xf32>, vector<16x32xf32>, vector<16x32xf32>, vector<16x32xf32> -> vector<16x128xf32>
    %c0_15 = arith.constant 0 : index
    %c0_16 = arith.constant 0 : index
    %51 = vector.load %arg9[%c0_15, %c0_16] : memref<256x48xf32, #tpu.memory_space<vmem>>, vector<256x48xf32>
    %c0_17 = arith.constant 0 : index
    %c0_18 = arith.constant 0 : index
    %c0_19 = arith.constant 0 : index
    %52 = vector.load %arg10[%c0_17, %c0_18, %c0_19] : memref<1x48x128xf32, #tpu.memory_space<vmem>>, vector<1x48x128xf32>
    %53 = vector.shape_cast %52 : vector<1x48x128xf32> to vector<48x128xf32>
    %cst_20 = arith.constant dense<0.000000e+00> : vector<256x128xf32>
    %54 = tpu.matmul %51, %53, %cst_20 {dimension_numbers = #tpu.dot_dimension_numbers<[1], [0], [0], [1], [0, 0, 1, 1], [], []>} : vector<256x48xf32>, vector<48x128xf32>, vector<256x128xf32> -> vector<256x128xf32>
    %55 = vector.shape_cast %54 : vector<256x128xf32> to vector<16x16x128xf32>
    %56 = vector.shape_cast %50 : vector<16x128xf32> to vector<16x1x128xf32>
    %57 = vector.shape_cast %41 : vector<16x128xf32> to vector<1x16x128xf32>
    %58 = vector.broadcast %56 : vector<16x1x128xf32> to vector<16x16x128xf32>
    %59 = vector.broadcast %57 : vector<1x16x128xf32> to vector<16x16x128xf32>
    %60 = arith.addf %58, %59 : vector<16x16x128xf32>
    %61 = arith.addf %60, %55 : vector<16x16x128xf32>
    %cst_21 = arith.constant 0.000000e+00 : f32
    %62 = vector.broadcast %cst_21 : f32 to vector<16x16x128xf32>
    %63 = arith.cmpf ogt, %61, %62 : vector<16x16x128xf32>
    %cst_22 = arith.constant 2.000000e-01 : f32
    %64 = vector.broadcast %cst_22 : f32 to vector<16x16x128xf32>
    %65 = arith.mulf %64, %61 : vector<16x16x128xf32>
    %66 = arith.select %63, %61, %65 : vector<16x16x128xi1>, vector<16x16x128xf32>
    %67 = vector.shape_cast %66 : vector<16x16x128xf32> to vector<256x128xf32>
    %c0_23 = arith.constant 0 : index
    %c0_24 = arith.constant 0 : index
    %68 = vector.load %arg6[%c0_23, %c0_24] : memref<128x128xf32, #tpu.memory_space<vmem>>, vector<128x128xf32>
    %cst_25 = arith.constant dense<0.000000e+00> : vector<256x128xf32>
    %69 = tpu.matmul %67, %68, %cst_25 {dimension_numbers = #tpu.dot_dimension_numbers<[1], [0], [0], [1], [0, 0, 1, 1], [], []>} : vector<256x128xf32>, vector<128x128xf32>, vector<256x128xf32> -> vector<256x128xf32>
    %70 = vector.shape_cast %69 : vector<256x128xf32> to vector<16x16x128xf32>
    %c0_26 = arith.constant 0 : index
    %c0_27 = arith.constant 0 : index
    %c0_28 = arith.constant 0 : index
    %71 = vector.load %arg8[%c0_26, %c0_27, %c0_28] : memref<16x16x128xf32, #tpu.memory_space<vmem>>, vector<16x16x128xf32>
    %72 = arith.addf %70, %71 : vector<16x16x128xf32>
    %cst_29 = arith.constant dense<0xFF800000> : vector<16x128xf32>
    %73 = vector.multi_reduction <maximumf>, %72, %cst_29 [1] : vector<16x16x128xf32> to vector<16x128xf32>
    %74 = vector.shape_cast %73 : vector<16x128xf32> to vector<16x1x128xf32>
    %75 = vector.broadcast %74 : vector<16x1x128xf32> to vector<16x16x128xf32>
    %76 = arith.subf %72, %75 : vector<16x16x128xf32>
    %77 = math.exp %76 : vector<16x16x128xf32>
    %cst_30 = arith.constant dense<0.000000e+00> : vector<16x128xf32>
    %78 = vector.multi_reduction <add>, %77, %cst_30 [1] : vector<16x16x128xf32> to vector<16x128xf32>
    %79 = vector.shape_cast %41 : vector<16x128xf32> to vector<1x16x128xf32>
    %80 = vector.broadcast %79 : vector<1x16x128xf32> to vector<16x16x128xf32>
    %81 = arith.mulf %77, %80 : vector<16x16x128xf32>
    %cst_31 = arith.constant dense<0.000000e+00> : vector<16x128xf32>
    %82 = vector.multi_reduction <add>, %81, %cst_31 [1] : vector<16x16x128xf32> to vector<16x128xf32>
    %83 = tpu.reciprocal %78 {approx = true} : vector<16x128xf32> -> vector<16x128xf32>
    %84 = arith.mulf %82, %83 : vector<16x128xf32>
    %c0_32 = arith.constant 0 : index
    %c0_33 = arith.constant 0 : index
    %85 = vector.load %arg7[%c0_32, %c0_33] : memref<1x128xf32, #tpu.memory_space<vmem>>, vector<1x128xf32>
    %86 = vector.broadcast %85 : vector<1x128xf32> to vector<16x128xf32>
    %87 = arith.addf %84, %86 : vector<16x128xf32>
    %88 = vector.shape_cast %87 : vector<16x128xf32> to vector<1x16x128xf32>
    %c0_34 = arith.constant 0 : index
    %c0_35 = arith.constant 0 : index
    %c0_36 = arith.constant 0 : index
    %89 = vector.load %arg11[%c0_34, %c0_35, %c0_36] : memref<1x16x128xf32, #tpu.memory_space<vmem>>, vector<1x16x128xf32>
    tpu.vector_store %arg11[%c0_34, %c0_35, %c0_36], %88 {strides = array<i32>} : memref<1x16x128xf32, #tpu.memory_space<vmem>>, vector<1x16x128xf32>,
    return
  }
  func.func @transform_0(%arg0: i32) -> (i32, i32, i32) {
    %c0_i32 = arith.constant 0 : i32
    %c0_i32_0 = arith.constant 0 : i32
    %c0_i32_1 = arith.constant 0 : i32
    return %arg0, %c0_i32, %c0_i32_0 : i32, i32, i32
  }
  func.func @transform_1(%arg0: i32) -> (i32, i32) {
    %c0_i32 = arith.constant 0 : i32
    %c0_i32_0 = arith.constant 0 : i32
    %c0_i32_1 = arith.constant 0 : i32
    return %c0_i32, %c0_i32_0 : i32, i32
  }
  func.func @transform_2(%arg0: i32) -> (i32, i32) {
    %c0_i32 = arith.constant 0 : i32
    %c0_i32_0 = arith.constant 0 : i32
    %c0_i32_1 = arith.constant 0 : i32
    return %c0_i32, %c0_i32_0 : i32, i32
  }
  func.func @transform_3(%arg0: i32) -> (i32, i32) {
    %c0_i32 = arith.constant 0 : i32
    %c0_i32_0 = arith.constant 0 : i32
    %c0_i32_1 = arith.constant 0 : i32
    return %c0_i32, %c0_i32_0 : i32, i32
  }
  func.func @transform_4(%arg0: i32) -> (i32, i32) {
    %c0_i32 = arith.constant 0 : i32
    %c0_i32_0 = arith.constant 0 : i32
    %c0_i32_1 = arith.constant 0 : i32
    return %c0_i32, %c0_i32_0 : i32, i32
  }
  func.func @transform_5(%arg0: i32) -> (i32, i32) {
    %c0_i32 = arith.constant 0 : i32
    %c0_i32_0 = arith.constant 0 : i32
    %c0_i32_1 = arith.constant 0 : i32
    return %c0_i32, %c0_i32_0 : i32, i32
  }
  func.func @transform_6(%arg0: i32) -> (i32, i32) {
    %c0_i32 = arith.constant 0 : i32
    %c0_i32_0 = arith.constant 0 : i32
    %c0_i32_1 = arith.constant 0 : i32
    return %c0_i32, %c0_i32_0 : i32, i32
  }
  func.func @transform_7(%arg0: i32) -> (i32, i32, i32) {
    %c0_i32 = arith.constant 0 : i32
    %c0_i32_0 = arith.constant 0 : i32
    %c0_i32_1 = arith.constant 0 : i32
    %c0_i32_2 = arith.constant 0 : i32
    return %c0_i32, %c0_i32_0, %c0_i32_1 : i32, i32, i32
  }
  func.func @transform_8(%arg0: i32) -> (i32, i32) {
    %c0_i32 = arith.constant 0 : i32
    %c0_i32_0 = arith.constant 0 : i32
    %c0_i32_1 = arith.constant 0 : i32
    return %c0_i32, %c0_i32_0 : i32, i32
  }
  func.func @transform_9(%arg0: i32) -> (i32, i32, i32) {
    %c0_i32 = arith.constant 0 : i32
    %c0_i32_0 = arith.constant 0 : i32
    %c0_i32_1 = arith.constant 0 : i32
    return %arg0, %c0_i32, %c0_i32_0 : i32, i32, i32
  }
  func.func @transform_10(%arg0: i32) -> (i32, i32, i32) {
    %c0_i32 = arith.constant 0 : i32
    %c0_i32_0 = arith.constant 0 : i32
    %c0_i32_1 = arith.constant 0 : i32
    return %arg0, %c0_i32, %c0_i32_0 : i32, i32, i32
  }
}

</mosaic_0001>

<bundles_post_ra>
// kernel: tpu_custom_call.1
= control target key start
LH: loop header
LB: loop body
LE: loop exit
PB: predicated region body
PF: predicated region fallthrough
CT: control target
= control target key end

     0   :  { %15 = vsyncpa [#allocation3], 0  ;;  %s4378_s0 = inlined_call_operand.hbm [shape: f32[8,16,32], index: 0, kind: input, shape index: {}]   ;;  %s4379_s1 = inlined_call_operand.vmem [shape: f32[1,32], index: 1, kind: input, shape index: {}]   ;;  %s4380_s2 = inlined_call_operand.vmem [shape: f32[1,32], index: 2, kind: input, shape index: {}]   ;;  %s4381_s3 = inlined_call_operand.hbm [shape: f32[32,64], index: 3, kind: input, shape index: {}]   ;;  %s4382_s4 = inlined_call_operand.vmem [shape: f32[1,64], index: 4, kind: input, shape index: {}]   ;;  %s4383_s5 = inlined_call_operand.hbm [shape: f32[128,128], index: 5, kind: input, shape index: {}]   ;;  %s4384_s6 = inlined_call_operand.vmem [shape: f32[1,128], index: 6, kind: input, shape index: {}]   ;;  %s4385_s7 = inlined_call_operand.vmem [shape: f32[16,16,128], index: 7, kind: input, shape index: {}]   ;;  %s4386_s8 = inlined_call_operand.vmem [shape: f32[256,48], index: 8, kind: input, shape index: {}]   ;;  %s4387_s9 = inlined_call_operand.vmem [shape: f32[2,48,128], index: 9, kind: input, shape index: {}]   ;;  %s4388_s10 = inlined_call_operand.hbm [shape: f32[2,16,128], index: 10, kind: output, shape index: {}]  }
   0x1   :  { %17 = vsyncpa [#allocation3 + $0x1], 0 }
   0x2   :  { %18 = vsyncpa [#allocation6], 0 }
   0x3   :  { %19 = vsyncpa [#allocation4], 0 }
   0x4   :  { %21 = vsyncpa [#allocation4 + $0x1], 0  ;;  %s3274_s13 = smov 0   ;;  %s3276_s14 = smov 0  }
   0x5   :  { %s3278_s15 = smov 0   ;;  %s3280_s16 = smov 0  }
   0x6 LB: > { %4396 = sst [smem:[#allocation12_spill]] %s3193_s13  ;;  %s3295_s17 = sadd.s32 4294967295, %s3205_s16   ;;  %s3205_s16 = sphi %s3280_s16, %s4418_s16   ;;  %s3201_s15 = sphi %s3278_s15, %s4417_s15   ;;  %s3197_s14 = sphi %s3276_s14, %s4416_s14   ;;  %s3193_s13 = sphi %s3274_s13, %s4415_s13  }
   0x7   : > { %s2468_s18 = sadd.s32 4294967294, %s3205_s16   ;;  %p47_p0 = scmp.ne.s32.totalorder %s3197_s14, %s3193_s13 }
   0x8   : > { %p4389_p1 = scmp.eq.s32.totalorder %s3295_s17, 0  ;;  %p271_p3 = scmp.eq.s32.totalorder %s2468_s18, 1 }
   0x9   : > { %p2469_p5 = scmp.ge.s32.totalorder %s3205_s16, 1  ;;  %p278_p7 = scmp.lt.s32.totalorder %s3205_s16, 3 }
   0xa   : > { %p3304_p4 = por %p4389_p1, %p47_p0  ;;  %p3309_p6 = por %p271_p3, %p47_p0 }
   0xb   : > { %p3314_p8 = pnand %p2469_p5, %p278_p7  ;;  %s3207_s22 = smov [#allocation5]  }
   0xc   : > { %s4397_s19 = scalar_select %p3304_p4, 1, 0 }
   0xd   : > { %s4398_s20 = scalar_select %p3309_p6, 1, 0 }
   0xe   : > { %s296_s23 = sshll.u32 %s3207_s22, 4  ;;  %p2874_p9 = pneg %p3314_p8  ;;  %s3318_s23 = int_to_ptr.vmem [resolvable:$true] %s296_s23 }
   0xf   : > { %4399 = sst [smem:[#allocation13_spill]] %s4398_s20  ;;  %s3208_s25 = smov [#allocation7]  }
  0x10   : > { %p3325_p11 = pnand %p2874_p9, %p4389_p1  ;;  %s312_s26 = sshll.u32 %s3208_s25, 4  ;;  %s3329_s26 = int_to_ptr.vmem [resolvable:$true] %s312_s26 }
  0x11   : > { %s3049_s29 = scalar_lea.hbm %s4381_s3, 512 }
  0x12   : > { %p3050_p12 = scmp.ne.s32.totalorder %s4381_s3, %s3049_s29  ;;  %p3051_p13 = pneg %p3325_p11 }
  0x13   : > { %p3056_p5 = scmp.lt.u32.totalorder %s3049_s29, %s4381_s3 }
  0x14   : > { %p3052_p0 = pnand %p3051_p13, %p3050_p12 }
  0x16   : > { %p3053_p3 = pneg %p3052_p0 }
  0x18   : > { %p3058_p7 = pnand %p3056_p5, %p3053_p3 }
  0x1a   : > { %3061 = shalt.err (!%p3058_p7)
}
  0x1b   : > { %s3062_s22 = scalar_lea.vmem %s3318_s23, 512  ;;  %p3070_p2 = scmp.lt.s32.totalorder %s3318_s23, %s3318_s23 }
  0x1c   : > { %p3063_p9 = scmp.ne.s32.totalorder %s3318_s23, %s3062_s22  ;;  %p3071_p12 = scmp.lt.s32.totalorder %s3062_s22, %s3062_s22 }
  0x1e   : > { %p3065_p10 = pnand %p3063_p9, %p3051_p13  ;;  %p3072_p0 = por %p3071_p12, %p3070_p2 }
  0x20   : > { %p3066_p1 = pneg %p3065_p10 }
  0x22   : > { %p3073_p6 = pnand %p3072_p0, %p3066_p1 }
  0x24   : > { %3076 = shalt.err (!%p3073_p6)
}
  0x25   : > { %s4392_s25 = smov 128   ;;  %s4393_s27 = smov 8  }
  0x26   : > { %2877 = dma.hbm_to_vmem [thread:$0]  (!%p3325_p11), %s4381_s3, 512, %s3318_s23, [#allocation6], %s4392_s25, %s4392_s25, %s4393_s27  }
  0x27   : > { %s3077_s12 = scalar_lea.hbm %s4383_s5, 2048 }
  0x28   : > { %p3078_p1 = scmp.ne.s32.totalorder %s4383_s5, %s3077_s12  ;;  %p3084_p10 = scmp.lt.u32.totalorder %s3077_s12, %s4383_s5 }
  0x2a   : > { %p3080_p2 = pnand %p3078_p1, %p3051_p13 }
  0x2c   : > { %p3081_p6 = pneg %p3080_p2 }
  0x2e   : > { %p3086_p3 = pnand %p3084_p10, %p3081_p6 }
  0x30   : > { %3089 = shalt.err (!%p3086_p3)
}
  0x31   : > { %s3090_s23 = scalar_lea.vmem %s3329_s26, 2048  ;;  %p3098_p12 = scmp.lt.s32.totalorder %s3329_s26, %s3329_s26 }
  0x32   : > { %p3091_p5 = scmp.ne.s32.totalorder %s3329_s26, %s3090_s23  ;;  %p3099_p0 = scmp.lt.s32.totalorder %s3090_s23, %s3090_s23 }
  0x34   : > { %p3093_p7 = pnand %p3091_p5, %p3051_p13  ;;  %p3100_p1 = por %p3099_p0, %p3098_p12 }
  0x36   : > { %p3094_p9 = pneg %p3093_p7 }
  0x38   : > { %p3101_p2 = pnand %p3100_p1, %p3094_p9 }
  0x3a   : > { %3104 = shalt.err (!%p3101_p2)
}
  0x3b   : > { %2880 = dma.hbm_to_vmem [thread:$0]  (!%p3325_p11), %s4383_s5, 2048, %s3329_s26, [#allocation6], %s4392_s25, %s4392_s25, %s4393_s27  }
  0x3c   : > { %s3390_s24 = sadd.s32 1, %s3205_s16   ;;  %s34_s28 = sadd.s32 1, %s3201_s15 }
  0x3d   : > { %s31_s29 = ssub.s32 %s3205_s16, %s3390_s24  ;;  %p41_p13 = scmp.ne.s32.totalorder %s3201_s15, %s3197_s14 }
  0x3e   : > { %p32_p6 = scmp.eq.s32.totalorder %s31_s29, 0  ;;  %p42_p10 = scmp.eq.s32.totalorder %s3205_s16, 0 }
  0x3f   : > { %p4402_p3 = scmp.eq.s32.totalorder %s3295_s17, 1  ;;  %p2891_p7 = scmp.lt.s32.totalorder %s3205_s16, 2 }
  0x40   : > { %s3406_s11 = scalar_select %p32_p6, %s3201_s15, %s34_s28  }
  0x41   : > { %p3400_p5 = por %p4402_p3, %p41_p13  ;;  %p43_p9 = por %p42_p10, %p41_p13 }
  0x42   : > { %s335_s12 = sand.u32 1, %s3201_s15   ;;  %s2533_s26 = sshll.u32 %s3205_s16, 10 }
  0x43   : > { %s4403_s30 = scalar_select %p3400_p5, 1, 0 }
  0x44   : > { %s2473_s18 = sshll.u32 %s335_s12, 6  ;;  %s3413_s13 = scalar_lea.hbm %s4378_s0, %s2533_s26 }
  0x45   : > { %s339_s20 = scalar_lea.vmem [#allocation2], %s2473_s18  ;;  %p3417_p11 = pnand %p2891_p7, %p43_p9 }
  0x46   : > { %s347_s29 = sshll.u32 %s339_s20, 4  ;;  %s3421_s25 = scalar_lea.sflag [#allocation3], %s335_s12  ;;  %s3415_s29 = int_to_ptr.vmem [resolvable:$true] %s347_s29 }
  0x47   : > { %s3105_s27 = scalar_lea.hbm %s3413_s13, 1024  ;;  %p3107_p0 = pneg %p3417_p11 }
  0x48   : > { %p3106_p12 = scmp.ne.s32.totalorder %s3413_s13, %s3105_s27  ;;  %s3110_s22 = scalar_lea.hbm %s4378_s0, 2048 }
  0x49   : > { %p3111_p13 = scmp.lt.u32.totalorder %s3413_s13, %s4378_s0  ;;  %p3112_p6 = scmp.lt.u32.totalorder %s3110_s22, %s3105_s27 }
  0x4a   : > { %p3108_p1 = pnand %p3107_p0, %p3106_p12  ;;  %p3114_p3 = scmp.lt.u32.totalorder %s3105_s27, %s3413_s13 }
  0x4b   : > { %p3113_p10 = por %p3112_p6, %p3111_p13 }
  0x4c   : > { %p3109_p2 = pneg %p3108_p1 }
  0x4d   : > { %p3115_p7 = por %p3114_p3, %p3113_p10 }
  0x4f   : > { %p3116_p9 = pnand %p3115_p7, %p3109_p2 }
  0x51   : > { %3119 = shalt.err (!%p3116_p9)
}
  0x52   : > { %s3120_s12 = scalar_lea.vmem %s3415_s29, 1024  ;;  %s3211_s18 = smov [#allocation2]  }
  0x53   : > { %p3121_p12 = scmp.ne.s32.totalorder %s3415_s29, %s3120_s12  ;;  %s3125_s26 = sshll.u32 %s3211_s18, 4  ;;  %s3126_s26 = int_to_ptr.vmem [resolvable:$false] %s3125_s26 }
  0x54   : > { %s3127_s23 = scalar_lea.vmem %s3126_s26, 2048  ;;  %p3128_p4 = scmp.lt.s32.totalorder %s3415_s29, %s3126_s26 }
  0x55   : > { %p3123_p1 = pnand %p3121_p12, %p3107_p0  ;;  %p3129_p13 = scmp.lt.s32.totalorder %s3127_s23, %s3120_s12 }
  0x57   : > { %p3124_p5 = pneg %p3123_p1  ;;  %p3130_p6 = por %p3129_p13, %p3128_p4 }
  0x59   : > { %p3131_p10 = pnand %p3130_p6, %p3124_p5 }
  0x5b   : > { %3134 = shalt.err (!%p3131_p10)
}
  0x5c   : > { %s4405_s27 = smov 8   ;;  %s4406_s22 = smov 128  }
  0x5d   : > { %2884 = dma.hbm_to_vmem [thread:$0]  (!%p3417_p11), %s3413_s13, 1024, %s3415_s29, %s3421_s25, %s4406_s22, %s4406_s22, %s4405_s27  }
  0x5e   : > { %367 = sbr.rel (%p3314_p8) target bundleno = 1192 (0x4a8), region = 60  ;;  %s3455_s20 = sand.u32 (!%p3314_p8), 1, %s3197_s14  }
  0x5f   : > { %s2478_s12 = sshll.u32 (!%p3314_p8), %s3455_s20, 6  ;;  %s370_s18 = scalar_lea.sflag (!%p3314_p8), [#allocation3], %s3455_s20 }
  0x60   : > { %s373_s26 = scalar_lea.vmem (!%p3314_p8), [#allocation2], %s2478_s12  ;;  %p4407_p4 = scmp.ne.s32.totalorder (!%p3314_p8), %s4397_s19, 0 }
  0x65   : > { %3180 = dma.done.wait (%p4407_p4), %s370_s18, 1024  }
  0x66   : > { %3182 = vsyncadd (%p4407_p4), %s370_s18, 4294966272  ;;  %p4408_p5 = scmp.eq.s32.totalorder %s3295_s17, 0 }
  0x68   : > { %3184 = dma.done.wait (%p4408_p5), [#allocation6], 2560   ;;  %p4409_p11 = pmov %p4408_p5 }
  0x69   : > { %vm437_vm0 = vcmask 261120   ;;  %v429_v0 = vld [vmem:[%s373_s26] sm:$0xff]  ;;  %v431_v1 = vld [vmem:[%s373_s26 + $0x10] sm:$0xff]  ;;  %v430_v2 = vld [vmem:[%s373_s26 + $0x8] sm:$0xff]  ;;  %p424_p8 = scmp.lt.s32.totalorder %s3295_s17, 1  ;;  %vm809_vm1 = vcmask 392192  }
  0x6a   : > { %3186 = vsyncadd (%p4409_p11), [#allocation6], 4294964736  ;;  %v438_v3 = vsel %vm437_vm0, %v429_v0, 0.0  ;;  %v444_v4 = vsel %vm437_vm0, %v431_v1, 0.0  ;;  %v432_v5 = vld [vmem:[%s373_s26 + $0x18] sm:$0xff]  ;;  %v441_v6 = vsel %vm437_vm0, %v430_v2, 0.0 }
  0x6b   : > { %439 = vadd.xlane.f32.xlu0 %v438_v3  ;;  %445 = vadd.xlane.f32.xlu1 %v444_v4  ;;  %v447_v7 = vsel %vm437_vm0, %v432_v5, 0.0  ;;  %v433_v8 = vld [vmem:[%s373_s26 + $0x20] sm:$0xff]  ;;  %v434_v9 = vld [vmem:[%s373_s26 + $0x28] sm:$0xff]  ;;  %v435_v12 = vld [vmem:[%s373_s26 + $0x30] sm:$0xff]  ;;  %s425_s25 = scalar_select %p424_p8, %s3295_s17, 1  ;;  %vm739_vm2 = vcmask 523264  }
  0x6c   : > { %v450_v10 = vsel %vm437_vm0, %v433_v8, 0.0  ;;  %v453_v11 = vsel %vm437_vm0, %v434_v9, 0.0  ;;  %v436_v13 = vld [vmem:[%s373_s26 + $0x38] sm:$0xff]  ;;  %v456_v14 = vsel %vm437_vm0, %v435_v12, 0.0  ;;  %v573_v56 = vld [vmem:[#allocation5] sm:$0xff]  ;;  %v574_v57 = vld [vmem:[#allocation5 + $0x8] sm:$0xff] }
  0x6d   : > { %v459_v15 = vsel %vm437_vm0, %v436_v13, 0.0  ;;  %v2793_v58 = vpack.c.bf16 %v574_v57, %v573_v56  ;;  %v575_v59 = vld [vmem:[#allocation5 + $0x10] sm:$0xff]  ;;  %v576_v60 = vld [vmem:[#allocation5 + $0x18] sm:$0xff]  ;;  %v771_v62 = vld [vmem:[%s4386_s8] sm:$0xff]  ;;  %s2861_s13 = smul.u32 48, %s425_s25  ;;  %s3213_s29 = smov 32  }
  0x6e   : > { %v2797_v61 = vpack.c.bf16 %v576_v60, %v575_v59  ;;  %2665 = vmatprep.mubr.msk.f32.mxu1 %vm809_vm1, %v771_v62  ;;  %s3214_s28 = smov 64   ;;  %vm742_vm3 = vcmask 785408   ;;  %s2481_s19 = sshll.u32 %s3455_s20, 4 }
  0x6f   : > { %442 = vadd.xlane.f32.xlu0 %v441_v6  ;;  %448 = vadd.xlane.f32.xlu1 %v447_v7  ;;  %s428_s23 = scalar_lea.vmem %s4387_s9, %s2861_s13  ;;  %s3212_s13 = smov 96  }
  0x70   : > { %2794 = vmatprep.subr.bf16.mxu0 %v2793_v58  ;;  %v803_v63 = vld [vmem:[%s428_s23] sm:$0xff]  ;;  %v806_v3 = vld [vmem:[%s428_s23 + $0x18] sm:$0xff]  ;;  %v808_v6 = vld [vmem:[%s428_s23 + $0x28] sm:$0xff]  ;;  %s4301_s21 = scalar_lea.vmem [#allocation8], %s2481_s19  ;;  %s2534_s25 = sshll.u32 %s3295_s17, 8 }
  0x71   : > { %2796 = vmatpush3.bf16.msra.mxu0 %v2793_v58  ;;  %s2351_s17 = scalar_lea.sflag [#allocation4], %s3455_s20  ;;  %p4410_p2 = scmp.ne.s32.totalorder %s4403_s30, 0 }
  0x72   : > { %2798 = vmatprep.subr.bf16.mxu0 %v2797_v61  ;;  %s3216_s22 = smov [#allocation8]  }
  0x73   : > { %451 = vadd.xlane.f32.xlu0 %v450_v10  ;;  %454 = vadd.xlane.f32.xlu1 %v453_v11  ;;  %v774_v10 = vld [vmem:[%s4386_s8 + $0x18] sm:$0xff]  ;;  %v775_v11 = vld [vmem:[%s4386_s8 + $0x20] sm:$0xff]  ;;  %s3139_s12 = sshll.u32 %s3216_s22, 4  ;;  %s3140_s12 = int_to_ptr.vmem [resolvable:$false] %s3139_s12 }
  0x74   : > { %s3141_s18 = scalar_lea.vmem %s3140_s12, 512 }
  0x75   : > { %2800 = vmatpush3.bf16.msra.mxu0 %v2797_v61 }
  0x77   : > { %457 = vadd.xlane.f32.xlu0 %v456_v14  ;;  %460 = vadd.xlane.f32.xlu1 %v459_v15  ;;  %v778_v14 = vld [vmem:[%s4386_s8 + $0x38] sm:$0xff]  ;;  %v779_v15 = vld [vmem:[%s4386_s8 + $0x40] sm:$0xff] }
  0xf8   : > { %v440_v16 = vpop.xlane.xlu0 %439  ;;  %v446_v17 = vpop.xlane.xlu1 %445 }
  0xf9   : > { %v463_v18 = vmul.f32 0.03125, %v440_v16  ;;  %v465_v19 = vmul.f32 0.03125, %v446_v17  ;;  %v780_v16 = vld [vmem:[%s4386_s8 + $0x48] sm:$0xff]  ;;  %v781_v17 = vld [vmem:[%s4386_s8 + $0x50] sm:$0xff] }
  0xfb   : > { %v3475_v20 = vsub.f32 %v429_v0, %v463_v18  ;;  %v3477_v21 = vsub.f32 %v431_v1, %v465_v19  ;;  %v804_v0 = vld [vmem:[%s428_s23 + $0x8] sm:$0xff]  ;;  %v805_v1 = vld [vmem:[%s428_s23 + $0x10] sm:$0xff]  ;;  %v782_v18 = vld [vmem:[%s4386_s8 + $0x58] sm:$0xff] }
  0xfc   : > { %v443_v22 = vpop.xlane.xlu0 %442  ;;  %v449_v23 = vpop.xlane.xlu1 %448  ;;  %v2805_v4 = vpack.c.bf16 %v806_v3, %v805_v1  ;;  %v783_v19 = vld [vmem:[%s4386_s8 + $0x60] sm:$0xff] }
  0xfd   : > { %v464_v24 = vmul.f32 0.03125, %v443_v22  ;;  %v466_v25 = vmul.f32 0.03125, %v449_v23  ;;  %v479_v26 = vmul.f32 %v3475_v20, %v3475_v20  ;;  %v481_v27 = vmul.f32 %v3477_v21, %v3477_v21  ;;  %v784_v22 = vld [vmem:[%s4386_s8 + $0x68] sm:$0xff]  ;;  %v785_v23 = vld [vmem:[%s4386_s8 + $0x70] sm:$0xff] }
  0xff   : > { %v3483_v28 = vsub.f32 %v430_v2, %v464_v24  ;;  %v3485_v29 = vsub.f32 %v432_v5, %v466_v25  ;;  %v487_v30 = vsel %vm437_vm0, %v479_v26, 0.0  ;;  %v493_v33 = vsel %vm437_vm0, %v481_v27, 0.0  ;;  %v807_v5 = vld [vmem:[%s428_s23 + $0x20] sm:$0xff]  ;;  %v786_v24 = vld [vmem:[%s4386_s8 + $0x78] sm:$0xff]  ;;  %v788_v26 = vld [vmem:[%s4386_s8 + $0x88] sm:$0xff]  ;;  %s4329_s23 = scalar_lea.hbm %s4388_s10, %s2534_s25 }
 0x100   : > { %488 = vadd.xlane.f32.xlu0 %v487_v30  ;;  %v452_v31 = vpop.xlane.xlu0 %451  ;;  %v455_v32 = vpop.xlane.xlu1 %454  ;;  %v2801_v2 = vpack.c.bf16 %v804_v0, %v803_v63  ;;  %v2809_v7 = vpack.c.bf16 %v808_v6, %v807_v5  ;;  %v787_v25 = vld [vmem:[%s4386_s8 + $0x80] sm:$0xff]  ;;  %v789_v27 = vld [vmem:[%s4386_s8 + $0x90] sm:$0xff]  ;;  %v790_v30 = vld [vmem:[%s4386_s8 + $0x98] sm:$0xff] }
 0x101   : > { %v467_v34 = vmul.f32 0.03125, %v452_v31  ;;  %v468_v35 = vmul.f32 0.03125, %v455_v32  ;;  %v480_v36 = vmul.f32 %v3483_v28, %v3483_v28  ;;  %v482_v37 = vmul.f32 %v3485_v29, %v3485_v29  ;;  %v791_v31 = vld [vmem:[%s4386_s8 + $0xa0] sm:$0xff]  ;;  %v792_v32 = vld [vmem:[%s4386_s8 + $0xa8] sm:$0xff] }
 0x102   : > { %2802 = vmatprep.subr.bf16.mxu1 %v2801_v2  ;;  %v2483_v5 = vld [vmem:[%s4379_s1] ss:$0 sm:$0xff] }
 0x103   : > { %v3493_v38 = vsub.f32 %v433_v8, %v467_v34  ;;  %v3495_v39 = vsub.f32 %v434_v9, %v468_v35  ;;  %v490_v40 = vsel %vm437_vm0, %v480_v36, 0.0  ;;  %v496_v43 = vsel %vm437_vm0, %v482_v37, 0.0  ;;  %2804 = vmatpush3.bf16.msra.mxu1 %v2801_v2  ;;  %v772_v8 = vld [vmem:[%s4386_s8 + $0x8] sm:$0xff]  ;;  %v773_v9 = vld [vmem:[%s4386_s8 + $0x10] sm:$0xff]  ;;  %v794_v34 = vld [vmem:[%s4386_s8 + $0xb8] sm:$0xff] }
 0x104   : > { %494 = vadd.xlane.f32.xlu0 %v493_v33  ;;  %491 = vadd.xlane.f32.xlu1 %v490_v40  ;;  %v458_v41 = vpop.xlane.xlu0 %457  ;;  %v461_v42 = vpop.xlane.xlu1 %460  ;;  %v793_v33 = vld [vmem:[%s4386_s8 + $0xb0] sm:$0xff]  ;;  %v795_v35 = vld [vmem:[%s4386_s8 + $0xc0] sm:$0xff]  ;;  %v796_v36 = vld [vmem:[%s4386_s8 + $0xc8] sm:$0xff] }
 0x105   : > { %v469_v44 = vmul.f32 0.03125, %v458_v41  ;;  %v470_v45 = vmul.f32 0.03125, %v461_v42  ;;  %v483_v46 = vmul.f32 %v3493_v38, %v3493_v38  ;;  %v484_v47 = vmul.f32 %v3495_v39, %v3495_v39  ;;  %2806 = vmatprep.subr.bf16.mxu1 %v2805_v4  ;;  %v797_v37 = vld [vmem:[%s4386_s8 + $0xd0] sm:$0xff]  ;;  %v798_v40 = vld [vmem:[%s4386_s8 + $0xd8] sm:$0xff]  ;;  %v799_v41 = vld [vmem:[%s4386_s8 + $0xe0] sm:$0xff] }
 0x106   : > { %v800_v42 = vld [vmem:[%s4386_s8 + $0xe8] sm:$0xff] }
 0x107   : > { %v3503_v48 = vsub.f32 %v435_v12, %v469_v44  ;;  %v3505_v49 = vsub.f32 %v436_v13, %v470_v45  ;;  %v499_v50 = vsel %vm437_vm0, %v483_v46, 0.0  ;;  %v502_v51 = vsel %vm437_vm0, %v484_v47, 0.0  ;;  %2808 = vmatpush3.bf16.msra.mxu1 %v2805_v4  ;;  %v776_v12 = vld [vmem:[%s4386_s8 + $0x28] sm:$0xff]  ;;  %v777_v13 = vld [vmem:[%s4386_s8 + $0x30] sm:$0xff]  ;;  %v802_v44 = vld [vmem:[%s4386_s8 + $0xf8] sm:$0xff] }
 0x108   : > { %497 = vadd.xlane.f32.xlu1 %v496_v43  ;;  %500 = vadd.xlane.f32.xlu0 %v499_v50  ;;  %v801_v43 = vld [vmem:[%s4386_s8 + $0xf0] sm:$0xff] }
 0x109   : > { %v485_v52 = vmul.f32 %v3503_v48, %v3503_v48  ;;  %v486_v53 = vmul.f32 %v3505_v49, %v3505_v49  ;;  %2810 = vmatprep.subr.bf16.mxu1 %v2809_v7 }
 0x10b   : > { %v505_v54 = vsel %vm437_vm0, %v485_v52, 0.0  ;;  %v508_v55 = vsel %vm437_vm0, %v486_v53, 0.0  ;;  %2812 = vmatpush3.bf16.msra.mxu1 %v2809_v7 }
 0x10c   : > { %503 = vadd.xlane.f32.xlu1 %v502_v51  ;;  %506 = vadd.xlane.f32.xlu0 %v505_v54 }
 0x10e   : > { %2666 = vmatmul.mubr.msk.f32.vlgmr.msra.gmra.mrb[0].mxu1 %vm809_vm1, %v772_v8 }
 0x10f   : > { %2668 = vmatprep.mubr.msk.f32.mxu1 %vm809_vm1, %v773_v9  ;;  %v2484_v9 = vld [vmem:[%s4380_s2] ss:$0 sm:$0xff] }
 0x110   : > { %509 = vadd.xlane.f32.xlu1 %v508_v55 }
 0x112   : > { %2669 = vmatmul.mubr.msk.f32.gmra.mrb[2].mxu1 %vm809_vm1, %v774_v10 }
 0x113   : > { %2671 = vmatprep.mubr.msk.f32.mxu1 %vm809_vm1, %v775_v11 }
 0x116   : > { %2672 = vmatmul.mubr.msk.f32.gmra.mrb[4].mxu1 %vm809_vm1, %v776_v12 }
 0x117   : > { %2674 = vmatprep.mubr.msk.f32.mxu1 %vm809_vm1, %v777_v13 }
 0x11a   : > { %2675 = vmatmul.mubr.msk.f32.gmra.mrb[6].mxu1 %vm809_vm1, %v778_v14 }
 0x11b   : > { %2677 = vmatprep.mubr.msk.f32.mxu1 %vm809_vm1, %v779_v15 }
 0x11e   : > { %2678 = vmatmul.mubr.msk.f32.gmra.mrb[8].mxu1 %vm809_vm1, %v780_v16 }
 0x11f   : > { %2680 = vmatprep.mubr.msk.f32.mxu1 %vm809_vm1, %v781_v17 }
 0x122   : > { %2681 = vmatmul.mubr.msk.f32.gmra.mrb[10].mxu1 %vm809_vm1, %v782_v18 }
 0x123   : > { %2683 = vmatprep.mubr.msk.f32.mxu1 %vm809_vm1, %v783_v19 }
 0x126   : > { %2684 = vmatmul.mubr.msk.f32.gmra.mrb[12].mxu1 %vm809_vm1, %v784_v22 }
 0x127   : > { %2686 = vmatprep.mubr.msk.f32.mxu1 %vm809_vm1, %v785_v23 }
 0x12a   : > { %2687 = vmatmul.mubr.msk.f32.gmra.mrb[14].mxu1 %vm809_vm1, %v786_v24 }
 0x12b   : > { %2689 = vmatprep.mubr.msk.f32.mxu1 %vm809_vm1, %v787_v25 }
 0x12e   : > { %2690 = vmatmul.mubr.msk.f32.gmra.mrb[16].mxu1 %vm809_vm1, %v788_v26 }
 0x12f   : > { %2692 = vmatprep.mubr.msk.f32.mxu1 %vm809_vm1, %v789_v27 }
 0x132   : > { %2693 = vmatmul.mubr.msk.f32.gmra.mrb[18].mxu1 %vm809_vm1, %v790_v30 }
 0x133   : > { %2695 = vmatprep.mubr.msk.f32.mxu1 %vm809_vm1, %v791_v31 }
 0x136   : > { %2696 = vmatmul.mubr.msk.f32.gmra.mrb[20].mxu1 %vm809_vm1, %v792_v32 }
 0x137   : > { %2698 = vmatprep.mubr.msk.f32.mxu1 %vm809_vm1, %v793_v33 }
 0x13a   : > { %2699 = vmatmul.mubr.msk.f32.gmra.mrb[22].mxu1 %vm809_vm1, %v794_v34 }
 0x13b   : > { %2701 = vmatprep.mubr.msk.f32.mxu1 %vm809_vm1, %v795_v35 }
 0x13e   : > { %2702 = vmatmul.mubr.msk.f32.gmra.mrb[24].mxu1 %vm809_vm1, %v796_v36 }
 0x13f   : > { %2704 = vmatprep.mubr.msk.f32.mxu1 %vm809_vm1, %v797_v37 }
 0x142   : > { %2705 = vmatmul.mubr.msk.f32.gmra.mrb[26].mxu1 %vm809_vm1, %v798_v40 }
 0x143   : > { %2707 = vmatprep.mubr.msk.f32.mxu1 %vm809_vm1, %v799_v41  ;;  %v1472_v41 = vld [vmem:[#allocation7 + $0x8] sm:$0xff] }
 0x146   : > { %2708 = vmatmul.mubr.msk.f32.gmra.mrb[28].mxu1 %vm809_vm1, %v800_v42 }
 0x147   : > { %2710 = vmatprep.mubr.msk.f32.mxu1 %vm809_vm1, %v801_v43  ;;  %v1473_v43 = vld [vmem:[#allocation7 + $0x10] sm:$0xff] }
 0x14a   : > { %2711 = vmatmul.mubr.msk.f32.gmra.mrb[30].mxu1 %vm809_vm1, %v802_v44  ;;  %v1474_v44 = vld [vmem:[#allocation7 + $0x18] sm:$0xff] }
 0x18d   : > { %v489_v45 = vpop.xlane.xlu0 %488 }
 0x18e   : > { %v511_v46 = vmul.f32 0.03125, %v489_v45  ;;  %v2817_v45 = vpack.c.bf16 %v1474_v44, %v1473_v43 }
 0x190   : > { %v519_v47 = vadd.f32 1e-05, %v511_v46  ;;  %v1476_v46 = vld [vmem:[#allocation7 + $0x28] sm:$0xff] }
 0x191   : > { %v492_v50 = vpop.xlane.xlu1 %491  ;;  %v495_v51 = vpop.xlane.xlu0 %494 }
 0x192   : > { %2937 = vrsqrt.f32 %v519_v47  ;;  %v512_v52 = vmul.f32 0.03125, %v492_v50  ;;  %v513_v53 = vmul.f32 0.03125, %v495_v51  ;;  %v1477_v50 = vld [vmem:[#allocation7 + $0x30] sm:$0xff]  ;;  %v1478_v51 = vld [vmem:[#allocation7 + $0x38] sm:$0xff] }
 0x194   : > { %v520_v54 = vadd.f32 1e-05, %v512_v52  ;;  %v521_v55 = vadd.f32 1e-05, %v513_v53  ;;  %v3673_v52 = vld [vmem:[%s4382_s4] ss:$0 sm:$0xff]  ;;  %v2825_v53 = vpack.c.bf16 %v1478_v51, %v1477_v50 }
 0x195   : > { %v498_v56 = vpop.xlane.xlu1 %497  ;;  %v501_v57 = vpop.xlane.xlu0 %500  ;;  %v3215_v50 = vmov 1966171168  }
 0x196   : > { %2939 = vrsqrt.f32 %v520_v54  ;;  %v514_v58 = vmul.f32 0.03125, %v498_v56  ;;  %v515_v59 = vmul.f32 0.03125, %v501_v57  ;;  %v1135_v51 = vunpack.c.l.s4 %v3215_v50 }
 0x197   : > { %2941 = vrsqrt.f32 %v521_v55 }
 0x198   : > { %v522_v60 = vadd.f32 1e-05, %v514_v58  ;;  %v523_v61 = vadd.f32 1e-05, %v515_v59  ;;  %v1479_v58 = vld [vmem:[#allocation7 + $0x40] sm:$0xff]  ;;  %v1480_v59 = vld [vmem:[#allocation7 + $0x48] sm:$0xff] }
 0x199   : > { %v504_v62 = vpop.xlane.xlu1 %503  ;;  %v507_v63 = vpop.xlane.xlu0 %506 }
 0x19a   : > { %2943 = vrsqrt.f32 %v522_v60  ;;  %v516_v0 = vmul.f32 0.03125, %v504_v62  ;;  %v517_v1 = vmul.f32 0.03125, %v507_v63  ;;  %v2829_v60 = vpack.c.bf16 %v1480_v59, %v1479_v58 }
 0x19b   : > { %2945 = vrsqrt.f32 %v523_v61 }
 0x19c   : > { %v2938_v2 = vpop.eup %2937  ;;  %v524_v3 = vadd.f32 1e-05, %v516_v0  ;;  %v525_v4 = vadd.f32 1e-05, %v517_v1 }
 0x19d   : > { %v510_v6 = vpop.xlane.xlu1 %509  ;;  %v535_v7 = vmul.f32 %v2938_v2, %v3475_v20 }
 0x19e   : > { %2947 = vrsqrt.f32 %v524_v3  ;;  %v518_v8 = vmul.f32 0.03125, %v510_v6 }
 0x19f   : > { %2949 = vrsqrt.f32 %v525_v4  ;;  %v550_v10 = vmul.f32 %v2483_v5, %v535_v7  ;;  %v1481_v4 = vld [vmem:[#allocation7 + $0x50] sm:$0xff] }
 0x1a0   : > { %v2940_v11 = vpop.eup %2939  ;;  %v526_v12 = vadd.f32 1e-05, %v518_v8 }
 0x1a1   : > { %v2942_v13 = vpop.eup %2941  ;;  %v565_v14 = vadd.f32 %v2484_v9, %v550_v10  ;;  %v536_v15 = vmul.f32 %v2940_v11, %v3483_v28 }
 0x1a2   : > { %2951 = vrsqrt.f32 %v526_v12  ;;  %v537_v16 = vmul.f32 %v2942_v13, %v3477_v21 }
 0x1a3   : > { %2641 = vmatprep.mubr.msk.f32.mxu0 %vm437_vm0, %v565_v14  ;;  %v551_v20 = vmul.f32 %v2483_v5, %v536_v15 }
 0x1a4   : > { %v2944_v17 = vpop.eup %2943  ;;  %v552_v18 = vmul.f32 %v2483_v5, %v537_v16 }
 0x1a5   : > { %v2946_v19 = vpop.eup %2945  ;;  %v566_v22 = vadd.f32 %v2484_v9, %v551_v20  ;;  %v538_v23 = vmul.f32 %v2944_v17, %v3485_v29 }
 0x1a6   : > { %v567_v24 = vadd.f32 %v2484_v9, %v552_v18  ;;  %v539_v25 = vmul.f32 %v2946_v19, %v3493_v38 }
 0x1a7   : > { %2642 = vmatmul.mubr.msk.f32.vlgmr.msra.gmra.mrb[0].mxu0 %vm437_vm0, %v566_v22  ;;  %v553_v26 = vmul.f32 %v2483_v5, %v538_v23  ;;  %v1483_v22 = vld [vmem:[#allocation7 + $0x60] sm:$0xff]  ;;  %v1484_v23 = vld [vmem:[#allocation7 + $0x68] sm:$0xff] }
 0x1a8   : > { %v2948_v27 = vpop.eup %2947  ;;  %2644 = vmatprep.mubr.msk.f32.mxu0 %vm437_vm0, %v567_v24  ;;  %v554_v28 = vmul.f32 %v2483_v5, %v539_v25  ;;  %v2837_v25 = vpack.c.bf16 %v1484_v23, %v1483_v22 }
 0x1a9   : > { %v2950_v21 = vpop.eup %2949  ;;  %v568_v30 = vadd.f32 %v2484_v9, %v553_v26  ;;  %v540_v31 = vmul.f32 %v2948_v27, %v3495_v39 }
 0x1aa   : > { %v569_v32 = vadd.f32 %v2484_v9, %v554_v28  ;;  %v541_v33 = vmul.f32 %v2950_v21, %v3503_v48  ;;  %v1471_v48 = vld [vmem:[#allocation7] sm:$0xff] }
 0x1ab   : > { %2645 = vmatmul.mubr.msk.f32.gmra.mrb[2].mxu0 %vm437_vm0, %v568_v30  ;;  %v555_v29 = vmul.f32 %v2483_v5, %v540_v31  ;;  %v2813_v42 = vpack.c.bf16 %v1472_v41, %v1471_v48  ;;  %v1485_v30 = vld [vmem:[#allocation7 + $0x70] sm:$0xff]  ;;  %v1486_v31 = vld [vmem:[#allocation7 + $0x78] sm:$0xff] }
 0x1ac   : > { %v2952_v34 = vpop.eup %2951  ;;  %2647 = vmatprep.mubr.msk.f32.mxu0 %vm437_vm0, %v569_v32  ;;  %v556_v38 = vmul.f32 %v2483_v5, %v541_v33  ;;  %v2841_v32 = vpack.c.bf16 %v1486_v31, %v1485_v30 }
 0x1ad   : > { %v570_v35 = vadd.f32 %v2484_v9, %v555_v29  ;;  %v542_v36 = vmul.f32 %v2952_v34, %v3505_v49  ;;  %2814 = vmatprep.subr.bf16.mxu0 %v2813_v42  ;;  %2845 = vmatprep.subr.bf16.mxu1 %v2813_v42  ;;  %v1475_v49 = vld [vmem:[#allocation7 + $0x20] sm:$0xff] }
 0x1ae   : > { %v571_v37 = vadd.f32 %v2484_v9, %v556_v38  ;;  %2816 = vmatpush3.bf16.msra.mxu0 %v2813_v42  ;;  %2853 = vmatpush3.bf16.msra.mxu1 %v2813_v42  ;;  %v2821_v47 = vpack.c.bf16 %v1476_v46, %v1475_v49 }
 0x1af   : > { %2648 = vmatmul.mubr.msk.f32.gmra.mrb[4].mxu0 %vm437_vm0, %v570_v35  ;;  %v557_v40 = vmul.f32 %v2483_v5, %v542_v36  ;;  %2818 = vmatprep.subr.bf16.mxu0 %v2817_v45  ;;  %v1482_v5 = vld [vmem:[#allocation7 + $0x58] sm:$0xff] }
 0x1b0   : > { %2650 = vmatprep.mubr.msk.f32.mxu0 %vm437_vm0, %v571_v37  ;;  %2846 = vmatprep.subr.bf16.mxu1 %v2817_v45  ;;  %v2833_v7 = vpack.c.bf16 %v1482_v5, %v1481_v4 }
 0x1b1   : > { %v572_v39 = vadd.f32 %v2484_v9, %v557_v40 }
 0x1b2   : > { %2820 = vmatpush3.bf16.msra.mxu0 %v2817_v45  ;;  %2854 = vmatpush3.bf16.msra.mxu1 %v2817_v45 }
 0x1b3   : > { %2651 = vmatmul.mubr.msk.f32.gmra.mrb[6].mxu0 %vm437_vm0, %v572_v39  ;;  %2822 = vmatprep.subr.bf16.mxu0 %v2821_v47 }
 0x1b4   : > { %2847 = vmatprep.subr.bf16.mxu1 %v2821_v47 }
 0x1b6   : > { %2824 = vmatpush3.bf16.msra.mxu0 %v2821_v47  ;;  %2855 = vmatpush3.bf16.msra.mxu1 %v2821_v47 }
 0x1b7   : > { %2826 = vmatprep.subr.bf16.mxu0 %v2825_v53  ;;  %2848 = vmatprep.subr.bf16.mxu1 %v2825_v53 }
 0x1ba   : > { %2828 = vmatpush3.bf16.msra.mxu0 %v2825_v53  ;;  %2856 = vmatpush3.bf16.msra.mxu1 %v2825_v53 }
 0x1bb   : > { %2830 = vmatprep.subr.bf16.mxu0 %v2829_v60  ;;  %2849 = vmatprep.subr.bf16.mxu1 %v2829_v60 }
 0x1be   : > { %2832 = vmatpush3.bf16.msra.mxu0 %v2829_v60  ;;  %2857 = vmatpush3.bf16.msra.mxu1 %v2829_v60 }
 0x1bf   : > { %2834 = vmatprep.subr.bf16.mxu0 %v2833_v7  ;;  %2850 = vmatprep.subr.bf16.mxu1 %v2833_v7 }
 0x1c2   : > { %2836 = vmatpush3.bf16.msra.mxu0 %v2833_v7  ;;  %2858 = vmatpush3.bf16.msra.mxu1 %v2833_v7 }
 0x1c3   : > { %2838 = vmatprep.subr.bf16.mxu0 %v2837_v25  ;;  %2851 = vmatprep.subr.bf16.mxu1 %v2837_v25 }
 0x1c6   : > { %2840 = vmatpush3.bf16.msra.mxu0 %v2837_v25  ;;  %2859 = vmatpush3.bf16.msra.mxu1 %v2837_v25 }
 0x1c7   : > { %2842 = vmatprep.subr.bf16.mxu0 %v2841_v32  ;;  %2852 = vmatprep.subr.bf16.mxu1 %v2841_v32 }
 0x1ca   : > { %2844 = vmatpush3.bf16.msra.mxu0 %v2841_v32  ;;  %2860 = vmatpush3.bf16.msra.mxu1 %v2841_v32 }
 0x1e1   : > { %v3675_v54 = vpop.f32.mrb[0].mxu1 }
 0x1e2   : > { %v3684_v62 = vpop.f32.mrb[1].mxu1 }
 0x1e5   : > { %v3689_v1 = vpop.f32.mrb[2].mxu1 }
 0x1e6   : > { %v3694_v3 = vpop.f32.mrb[3].mxu1 }
 0x1e9   : > { %v3696_v6 = vpop.f32.mrb[4].mxu1 }
 0x1ea   : > { %v3702_v9 = vpop.f32.mrb[5].mxu1 }
 0x1ed   : > { %v3705_v12 = vpop.f32.mrb[6].mxu1 }
 0x1ee   : > { %v3708_v14 = vpop.f32.mrb[7].mxu1 }
 0x1f1   : > { %v3710_v15 = vpop.f32.mrb[8].mxu1 }
 0x1f2   : > { %v3714_v20 = vpop.f32.mrb[9].mxu1 }
 0x1f5   : > { %v3718_v24 = vpop.f32.mrb[10].mxu1 }
 0x1f6   : > { %v3722_v26 = vpop.f32.mrb[11].mxu1 }
 0x1f9   : > { %v3726_v27 = vpop.f32.mrb[12].mxu1 }
 0x1fa   : > { %v3728_v28 = vpop.f32.mrb[13].mxu1 }
 0x1fd   : > { %v3730_v21 = vpop.f32.mrb[14].mxu1 }
 0x1fe   : > { %v3735_v29 = vpop.f32.mrb[15].mxu1 }
 0x201   : > { %v3737_v34 = vpop.f32.mrb[16].mxu1 }
 0x202   : > { %v3740_v38 = vpop.f32.mrb[17].mxu1 }
 0x205   : > { %v3742_v35 = vpop.f32.mrb[18].mxu1 }
 0x206   : > { %v3745_v36 = vpop.f32.mrb[19].mxu1 }
 0x209   : > { %v3747_v37 = vpop.f32.mrb[20].mxu1 }
 0x20a   : > { %v3749_v40 = vpop.f32.mrb[21].mxu1 }
 0x20d   : > { %v3751_v39 = vpop.f32.mrb[22].mxu1 }
 0x20e   : > { %v3753_v48 = vpop.f32.mrb[23].mxu1 }
 0x211   : > { %v3755_v41 = vpop.f32.mrb[24].mxu1 }
 0x212   : > { %v3757_v42 = vpop.f32.mrb[25].mxu1 }
 0x215   : > { %v3759_v43 = vpop.f32.mrb[26].mxu1 }
 0x216   : > { %v3761_v44 = vpop.f32.mrb[27].mxu1 }
 0x219   : > { %v3763_v45 = vpop.f32.mrb[28].mxu1 }
 0x21a   : > { %v3765_v49 = vpop.f32.mrb[29].mxu1 }
 0x21d   : > { %v3767_v46 = vpop.f32.mrb[30].mxu1 }
 0x21e   : > { %v3769_v47 = vpop.f32.mrb[31].mxu1 }
 0x27a   : > { %v3677_v55 = vpop.f32.mrb[0].mxu0 }
 0x27b   : > { %v674_v56 = vpop.f32.mrb[1].mxu0  ;;  %v680_v33 = vadd.f32 %v3677_v55, %v3673_v52 }
 0x27c   : > { %v3680_v57 = vadd.f32 %v3673_v52, %v674_v56  ;;  %v1136_v56 = vunpack.c.0.s8 %v1135_v51 }
 0x27e   : > { %747 = vrot.lane.b32.xlu0 %v3680_v57, %s3212_s13  ;;  %v2646_v61 = vpop.f32.mrb[2].mxu0 }
 0x27f   : > { %v3687_v63 = vadd.f32 %v2646_v61, %v3673_v52  ;;  %v684_v0 = vpop.f32.mrb[3].mxu0 }
 0x280   : > { %v3692_v2 = vadd.f32 %v3673_v52, %v684_v0 }
 0x282   : > { %717 = vrot.lane.b32.xlu0 %v3687_v63, %s3213_s29  ;;  %715 = vrot.lane.b32.xlu1 %v3692_v2, %s3213_s29  ;;  %v2649_v8 = vpop.f32.mrb[4].mxu0 }
 0x283   : > { %v700_v10 = vadd.f32 %v2649_v8, %v3673_v52  ;;  %v694_v11 = vpop.f32.mrb[5].mxu0 }
 0x284   : > { %v695_v13 = vadd.f32 %v3673_v52, %v694_v11 }
 0x286   : > { %725 = vrot.lane.b32.xlu0 %v700_v10, %s3214_s28  ;;  %753 = vrot.lane.b32.xlu1 %v695_v13, %s3213_s29  ;;  %v2652_v16 = vpop.f32.mrb[6].mxu0 }
 0x287   : > { %v710_v17 = vadd.f32 %v2652_v16, %v3673_v52  ;;  %v704_v18 = vpop.f32.mrb[7].mxu0 }
 0x288   : > { %v705_v19 = vadd.f32 %v3673_v52, %v704_v18  ;;  %v1137_v52 = vlaneseq }
 0x28a   : > { %733 = vrot.lane.b32.xlu0 %v710_v17, %s3212_s13  ;;  %759 = vrot.lane.b32.xlu1 %v705_v19, %s3214_s28  ;;  %v1138_v58 = vshrl.u32 %v1137_v52, 7 }
 0x28c   : > { %v3771_v60 = vsub.s32 %v1136_v56, %v1138_v58 }
 0x28e   : > { %755 = vrot.lane.b32.xlu0 %v700_v10, %s3213_s29  ;;  %723 = vrot.lane.b32.xlu1 %v695_v13, %s3214_s28 }
 0x292   : > { %731 = vrot.lane.b32.xlu1 %v705_v19, %s3212_s13 }
 0x296   : > { %749 = vrot.lane.b32.xlu1 %v680_v33, %s3212_s13  ;;  %s2364_s13 = sshll.u32 %s4301_s21, 4  ;;  %s4331_s13 = int_to_ptr.vmem [resolvable:$true] %s2364_s13 }
 0x297   : > { %s3135_s27 = scalar_lea.vmem %s4331_s13, 256  ;;  %p3142_p9 = scmp.lt.s32.totalorder %s4331_s13, %s3140_s12 }
 0x298   : > { %p3136_p0 = scmp.ne.s32.totalorder %s4331_s13, %s3135_s27  ;;  %p3143_p12 = scmp.lt.s32.totalorder %s3141_s18, %s3135_s27 }
 0x29a   : > { %761 = vrot.lane.b32.xlu1 %v710_v17, %s3214_s28  ;;  %v3779_v17 = vsub.s32 0, %v1138_v58  ;;  %p3137_p3 = pnand %p3136_p0, %p4410_p2  ;;  %p3144_p1 = por %p3143_p12, %p3142_p9 }
 0x29c   : > { %p3138_p7 = pneg %p3137_p3 }
 0x29e   : > { %p3145_p13 = pnand %p3144_p1, %p3138_p7 }
 0x2f0   : > { %v748_v55 = vpop.permute.xlu0 %747 }
 0x2f1   : > { %v765_v61 = vsel %vm437_vm0, %v748_v55, %v3692_v2 }
 0x2f4   : > { %v716_v53 = vpop.permute.xlu1 %715  ;;  %v718_v0 = vpop.permute.xlu0 %717 }
 0x2f5   : > { %v737_v19 = vsel %vm437_vm0, %v3680_v57, %v716_v53  ;;  %v738_v57 = vsel %vm437_vm0, %v680_v33, %v718_v0 }
 0x2f8   : > { %v754_v59 = vpop.permute.xlu1 %753  ;;  %v726_v18 = vpop.permute.xlu0 %725 }
 0x2f9   : > { %v767_v4 = vsel %vm739_vm2, %v765_v61, %v754_v59  ;;  %v741_v58 = vsel %vm739_vm2, %v738_v57, %v726_v18 }
 0x2fc   : > { %v760_v5 = vpop.permute.xlu1 %759  ;;  %v734_v52 = vpop.permute.xlu0 %733 }
 0x2fd   : > { %v769_v7 = vsel %vm742_vm3, %v767_v4, %v760_v5  ;;  %v3798_v4 = vsel %vm742_vm3, %v741_v58, %v734_v52 }
 0x2fe   : > { %v1140_v8 = vrot.slane %v769_v7, %v3771_v60  ;;  %v1133_v13 = vcombine.high %v769_v7, %v769_v7 }
 0x300   : > { %v1148_v10 = vcombine.high %v1140_v8, %v1140_v8  ;;  %v724_v11 = vpop.permute.xlu1 %723  ;;  %v1156_v16 = vrot.slane %v1140_v8, %v3771_v60  ;;  %v1147_v25 = vrot.slane %v1133_v13, %v3771_v60 }
 0x301   : > { %v740_v22 = vsel %vm739_vm2, %v737_v19, %v724_v11 }
 0x302   : > { %v1170_v2 = vrot.slane %v1148_v10, %v3771_v60  ;;  %v1234_v30 = vrot.slane %v1156_v16, %v3779_v17  ;;  %v1178_v32 = vcombine.high %v1156_v16, %v1156_v16  ;;  %v1149_v53 = vcombine.high %v1147_v25, %v1147_v25  ;;  %v756_v16 = vpop.permute.xlu0 %755 }
 0x303   : > { %v1163_v56 = vrot.slane %v1147_v25, %v3771_v60 }
 0x304   : > { %v732_v23 = vpop.permute.xlu1 %731  ;;  %v1238_v50 = vrot.slane %v1170_v2, %v3779_v17  ;;  %v1242_v59 = vrot.slane %v1178_v32, %v3779_v17  ;;  %v1180_v5 = vcombine.high %v1170_v2, %v1170_v2  ;;  %v1312_v8 = vadd.f32 %v1234_v30, %v3798_v4 }
 0x305   : > { %v3788_v31 = vsel %vm742_vm3, %v740_v22, %v732_v23  ;;  %v1250_v33 = vrot.slane %v1163_v56, %v3779_v17  ;;  %v1177_v0 = vrot.slane %v1149_v53, %v3771_v60 }
 0x306   : > { %v1311_v51 = vadd.f32 %v1234_v30, %v3788_v31  ;;  %v1313_v7 = vadd.f32 %v1238_v50, %v3788_v31  ;;  %v1314_v10 = vadd.f32 %v1238_v50, %v3798_v4  ;;  %v1316_v13 = vadd.f32 %v1242_v59, %v3798_v4 }
 0x307   : > { %v1246_v2 = vrot.slane %v1180_v5, %v3779_v17  ;;  %v1344_v25 = vadd.f32 %v3675_v54, %v1312_v8  ;;  %v1315_v30 = vadd.f32 %v1242_v59, %v3788_v31  ;;  %v1254_v52 = vrot.slane %v1177_v0, %v3779_v17 }
 0x308   : > { %v750_v55 = vpop.permute.xlu1 %749  ;;  %v1343_v61 = vadd.f32 %v1311_v51, %v3684_v62  ;;  %v1179_v62 = vcombine.high %v1163_v56, %v1163_v56  ;;  %v1345_v22 = vadd.f32 %v1313_v7, %v3694_v3  ;;  %v1346_v50 = vadd.f32 %v3689_v1, %v1314_v10 }
 0x309   : > { %v766_v19 = vsel %vm437_vm0, %v750_v55, %v3687_v63  ;;  %v1320_v51 = vadd.f32 %v1250_v33, %v3798_v4  ;;  %v3818_v63 = vadd.f32 %v3696_v6, %v1316_v13  ;;  %v1318_v53 = vadd.f32 %v1246_v2, %v3798_v4 }
 0x30a   : > { %v1407_v18 = vmul.f32 0.2, %v1343_v61  ;;  %v768_v23 = vsel %vm739_vm2, %v766_v19, %v756_v16  ;;  %vm1375_vm4 = vcmp.gt.f32.partialorder %v1343_v61, 0.0  ;;  %v1258_v3 = vrot.slane %v1179_v62, %v3779_v17 }
 0x30b   : > { %v1319_v54 = vadd.f32 %v1250_v33, %v3788_v31  ;;  %v1409_v56 = vmul.f32 0.2, %v1345_v22  ;;  %v1181_v58 = vcombine.high %v1177_v0, %v1177_v0  ;;  %v1347_v1 = vadd.f32 %v1315_v30, %v3702_v9 }
 0x30c   : > { %v762_v11 = vpop.permute.xlu1 %761  ;;  %v1439_v57 = vsel %vm1375_vm4, %v1343_v61, %v1407_v18  ;;  %vm1376_vm5 = vcmp.gt.f32.partialorder %v1344_v25, 0.0  ;;  %v1408_v59 = vmul.f32 0.2, %v1344_v25  ;;  %vm1377_vm6 = vcmp.gt.f32.partialorder %v1345_v22, 0.0 }
 0x30d   : > { %v770_v32 = vsel %vm742_vm3, %v768_v23, %v762_v11  ;;  %2745 = vmatprep.mubr.f32.mxu0 %v1439_v57  ;;  %v3825_v5 = vadd.f32 %v3710_v15, %v1320_v51  ;;  %v1317_v6 = vadd.f32 %v1246_v2, %v3788_v31  ;;  %v1322_v7 = vadd.f32 %v1254_v52, %v3798_v4 }
 0x30e   : > { %v1182_v55 = vcombine.high %v770_v32, %v770_v32  ;;  %v1321_v61 = vadd.f32 %v1254_v52, %v3788_v31  ;;  %v1410_v8 = vmul.f32 0.2, %v1346_v50  ;;  %v1324_v10 = vadd.f32 %v1258_v3, %v3798_v4 }
 0x30f   : > { %v1440_v0 = vsel %vm1376_vm5, %v1344_v25, %v1408_v59  ;;  %v1350_v9 = vadd.f32 %v3705_v12, %v1318_v53  ;;  %v1323_v11 = vadd.f32 %v1258_v3, %v3788_v31  ;;  %v1262_v13 = vrot.slane %v1181_v58, %v3779_v17 }
 0x310   : > { %v1196_v33 = vrot.slane %v1182_v55, %v3771_v60  ;;  %2746 = vmatmul.mubr.f32.vlgmr.msra.gmra.mrb[8].mxu0 %v1440_v0  ;;  %v1441_v15 = vsel %vm1377_vm6, %v1345_v22, %v1409_v56  ;;  %v1351_v16 = vadd.f32 %v1319_v54, %v3714_v20  ;;  %v1411_v18 = vmul.f32 0.2, %v1347_v1 }
 0x311   : > { %v1189_v62 = vrot.slane %v770_v32, %v3771_v60  ;;  %2748 = vmatprep.mubr.f32.mxu0 %v1441_v15  ;;  %vm1378_vm7 = vcmp.gt.f32.partialorder %v1346_v50, 0.0  ;;  %v1412_v19 = vmul.f32 0.2, %v3818_v63  ;;  %v1349_v2 = vadd.f32 %v1317_v6, %v3708_v14 }
 0x312   : > { %v3840_v23 = vadd.f32 %v3718_v24, %v1322_v7  ;;  %v3843_v12 = vadd.f32 %v1321_v61, %v3722_v26  ;;  %v3846_v25 = vadd.f32 %v3726_v27, %v1324_v10  ;;  %v1198_v22 = vcombine.high %v1196_v33, %v1196_v33 }
 0x313   : > { %v1442_v20 = vsel %vm1378_vm7, %v1346_v50, %v1410_v8  ;;  %vm1379_vm8 = vcmp.gt.f32.partialorder %v1347_v1, 0.0  ;;  %v1414_v30 = vmul.f32 0.2, %v1350_v9  ;;  %v1416_v32 = vmul.f32 0.2, %v3825_v5 }
 0x314   : > { %v3850_v51 = vadd.f32 %v1323_v11, %v3728_v28  ;;  %v1325_v14 = vadd.f32 %v1262_v13, %v3788_v31  ;;  %2749 = vmatmul.mubr.f32.gmra.mrb[10].mxu0 %v1442_v20  ;;  %v1415_v24 = vmul.f32 0.2, %v1351_v16  ;;  %v1326_v52 = vadd.f32 %v1262_v13, %v3798_v4 }
 0x315   : > { %v1197_v26 = vcombine.high %v1189_v62, %v1189_v62  ;;  %v1443_v3 = vsel %vm1379_vm8, %v1347_v1, %v1411_v18  ;;  %v3855_v27 = vmul.f32 0.2, %v3840_v23  ;;  %v1413_v55 = vmul.f32 0.2, %v1349_v2 }
 0x316   : > { %v1417_v50 = vmul.f32 0.2, %v3843_v12  ;;  %2751 = vmatprep.mubr.f32.mxu0 %v1443_v3  ;;  %v3859_v57 = vmul.f32 0.2, %v3846_v25  ;;  %v1205_v28 = vrot.slane %v1189_v62, %v3771_v60  ;;  %v3863_v53 = vrot.slane %v1196_v33, %v3771_v60 }
 0x317   : > { %v1226_v54 = vrot.slane %v1198_v22, %v3771_v60  ;;  %v3867_v56 = vmul.f32 0.2, %v3850_v51  ;;  %v3870_v58 = vadd.f32 %v1325_v14, %v3735_v29  ;;  %vm1380_vm9 = vcmp.gt.f32.partialorder %v3818_v63, 0.0 }
 0x318   : > { %vm1381_vm10 = vcmp.gt.f32.partialorder %v1349_v2, 0.0  ;;  %v3874_v1 = vadd.f32 %v3730_v21, %v1326_v52  ;;  %v3877_v59 = vrot.slane %v1197_v26, %v3771_v60  ;;  %v1444_v7 = vsel %vm1380_vm9, %v3818_v63, %v1412_v19 }
 0x319   : > { %v1286_v6 = vrot.slane %v1226_v54, %v3779_v17  ;;  %2752 = vmatmul.mubr.f32.gmra.mrb[12].mxu0 %v1444_v7  ;;  %v1445_v61 = vsel %vm1381_vm10, %v1349_v2, %v1413_v55  ;;  %v1228_v8 = vcombine.high %v3863_v53, %v3863_v53  ;;  %v1230_v29 = vcombine.high %v1226_v54, %v1226_v54 }
 0x31a   : > { %vm1382_vm11 = vcmp.gt.f32.partialorder %v1350_v9, 0.0  ;;  %v1266_v10 = vrot.slane %v1205_v28, %v3779_v17  ;;  %2754 = vmatprep.mubr.f32.mxu0 %v1445_v61  ;;  %vm1383_vm12 = vcmp.gt.f32.partialorder %v1351_v16, 0.0  ;;  %v3887_v60 = vmul.f32 0.2, %v3870_v58 }
 0x31b   : > { %v1338_v33 = vadd.f32 %v1286_v6, %v3798_v4  ;;  %v1337_v21 = vadd.f32 %v1286_v6, %v3788_v31  ;;  %v1227_v0 = vcombine.high %v1205_v28, %v1205_v28  ;;  %v1290_v63 = vrot.slane %v1228_v8, %v3779_v17 }
 0x31c   : > { %v1294_v11 = vrot.slane %v1230_v29, %v3779_v17  ;;  %v1270_v13 = vrot.slane %v3877_v59, %v3779_v17  ;;  %v1446_v62 = vsel %vm1382_vm11, %v1350_v9, %v1414_v30  ;;  %v1447_v20 = vsel %vm1383_vm12, %v1351_v16, %v1415_v24 }
 0x31d   : > { %v1370_v15 = vadd.f32 %v3759_v43, %v1338_v33  ;;  %v1369_v18 = vadd.f32 %v1337_v21, %v3761_v44  ;;  %v1340_v19 = vadd.f32 %v1290_v63, %v3798_v4  ;;  %v1339_v2 = vadd.f32 %v1290_v63, %v3788_v31  ;;  %2755 = vmatmul.mubr.f32.gmra.mrb[14].mxu0 %v1446_v62 }
 0x31e   : > { %v1341_v22 = vadd.f32 %v1294_v11, %v3788_v31  ;;  %v1327_v14 = vadd.f32 %v1266_v10, %v3788_v31  ;;  %v1229_v52 = vcombine.high %v3877_v59, %v3877_v59  ;;  %v1342_v26 = vadd.f32 %v1294_v11, %v3798_v4  ;;  %2757 = vmatprep.mubr.f32.mxu0 %v1447_v20 }
 0x31f   : > { %vm1384_vm13 = vcmp.gt.f32.partialorder %v3825_v5, 0.0  ;;  %vm1402_vm14 = vcmp.gt.f32.partialorder %v1370_v15, 0.0  ;;  %v1434_v43 = vmul.f32 0.2, %v1370_v15  ;;  %v1433_v44 = vmul.f32 0.2, %v1369_v18 }
 0x320   : > { %v1371_v9 = vadd.f32 %v1339_v2, %v3765_v49  ;;  %v1372_v30 = vadd.f32 %v3763_v45, %v1340_v19  ;;  %v1373_v3 = vadd.f32 %v1341_v22, %v3769_v47  ;;  %v1448_v16 = vsel %vm1384_vm13, %v3825_v5, %v1416_v32 }
 0x321   : > { %vm1385_vm15 = vcmp.gt.f32.partialorder %v3843_v12, 0.0  ;;  %v1328_v24 = vadd.f32 %v1266_v10, %v3798_v4  ;;  %v1274_v55 = vrot.slane %v1227_v0, %v3779_v17  ;;  %2758 = vmatmul.mubr.f32.gmra.mrb[16].mxu0 %v1448_v16  ;;  %v1329_v59 = vadd.f32 %v1270_v13, %v3788_v31  ;;  %v1713_v16 = vld [vmem:[%s4385_s7 + $0x8] sm:$0xff] }
 0x322   : > { %v1435_v28 = vmul.f32 0.2, %v1371_v9  ;;  %v1449_v54 = vsel %vm1385_vm15, %v3843_v12, %v1417_v50  ;;  %v1466_v6 = vsel %vm1402_vm14, %v1370_v15, %v1434_v43  ;;  %vm1401_vm0 = vcmp.gt.f32.partialorder %v1369_v18, 0.0 }
 0x323   : > { %2760 = vmatprep.mubr.f32.mxu0 %v1449_v54  ;;  %vm1403_vm1 = vcmp.gt.f32.partialorder %v1371_v9, 0.0  ;;  %v1359_v45 = vadd.f32 %v1327_v14, %v3740_v38  ;;  %v1465_v49 = vsel %vm1401_vm0, %v1369_v18, %v1433_v44  ;;  %vm1386_vm2 = vcmp.gt.f32.partialorder %v3840_v23, 0.0 }
 0x324   : > { %vm1387_vm3 = vcmp.gt.f32.partialorder %v3850_v51, 0.0  ;;  %v1436_v47 = vmul.f32 0.2, %v1372_v30  ;;  %v1374_v5 = vadd.f32 %v3767_v46, %v1342_v26  ;;  %v1437_v32 = vmul.f32 0.2, %v1373_v3  ;;  %2784 = vmatprep.mubr.f32.mxu1 %v1465_v49 }
 0x325   : > { %v1450_v12 = vsel %vm1386_vm2, %v3840_v23, %v3855_v27  ;;  %2785 = vmatmul.mubr.f32.vlgmr.msra.gmra.mrb[32].mxu1 %v1466_v6  ;;  %v1467_v50 = vsel %vm1403_vm1, %v1371_v9, %v1435_v28  ;;  %v1451_v7 = vsel %vm1387_vm3, %v3850_v51, %v3867_v56  ;;  %vm1404_vm4 = vcmp.gt.f32.partialorder %v1372_v30, 0.0  ;;  %v1714_v6 = vld [vmem:[%s4385_s7 + $0x10] sm:$0xff] }
 0x326   : > { %2761 = vmatmul.mubr.f32.gmra.mrb[18].mxu0 %v1450_v12  ;;  %vm1388_vm5 = vcmp.gt.f32.partialorder %v3846_v25, 0.0  ;;  %v1422_v38 = vmul.f32 0.2, %v3874_v1  ;;  %v1330_v61 = vadd.f32 %v1270_v13, %v3798_v4  ;;  %2787 = vmatprep.mubr.f32.mxu1 %v1467_v50  ;;  %vm1405_vm6 = vcmp.gt.f32.partialorder %v1373_v3, 0.0 }
 0x327   : > { %2763 = vmatprep.mubr.f32.mxu0 %v1451_v7  ;;  %vm1389_vm7 = vcmp.gt.f32.partialorder %v3870_v58, 0.0  ;;  %v1423_v46 = vmul.f32 0.2, %v1359_v45  ;;  %v1361_v23 = vadd.f32 %v1329_v59, %v3745_v36  ;;  %v1331_v27 = vadd.f32 %v1274_v55, %v3788_v31  ;;  %v1715_v59 = vld [vmem:[%s4385_s7 + $0x18] sm:$0xff] }
 0x328   : > { %v1278_v8 = vrot.slane %v1229_v52, %v3779_v17  ;;  %v1438_v51 = vmul.f32 0.2, %v1374_v5  ;;  %v1468_v56 = vsel %vm1404_vm4, %v1372_v30, %v1436_v47  ;;  %v1452_v29 = vsel %vm1388_vm5, %v3846_v25, %v3859_v57 }
 0x329   : > { %v1360_v10 = vadd.f32 %v3737_v34, %v1328_v24  ;;  %2788 = vmatmul.mubr.f32.gmra.mrb[34].mxu1 %v1468_v56  ;;  %v1469_v33 = vsel %vm1405_vm6, %v1373_v3, %v1437_v32  ;;  %v1453_v21 = vsel %vm1389_vm7, %v3870_v58, %v3887_v60  ;;  %vm1406_vm8 = vcmp.gt.f32.partialorder %v1374_v5, 0.0 }
 0x32a   : > { %2764 = vmatmul.mubr.f32.gmra.mrb[20].mxu0 %v1452_v29  ;;  %vm1390_vm9 = vcmp.gt.f32.partialorder %v3874_v1, 0.0  ;;  %2790 = vmatprep.mubr.f32.mxu1 %v1469_v33  ;;  %vm1391_vm10 = vcmp.gt.f32.partialorder %v1359_v45, 0.0  ;;  %v1362_v36 = vadd.f32 %v3742_v35, %v1330_v61  ;;  %v1332_v0 = vadd.f32 %v1274_v55, %v3798_v4  ;;  %v1716_v61 = vld [vmem:[%s4385_s7 + $0x20] sm:$0xff]  ;;  %v1719_v33 = vld [vmem:[%s4385_s7 + $0x38] sm:$0xff] }
 0x32b   : > { %2766 = vmatprep.mubr.f32.mxu0 %v1453_v21  ;;  %v1333_v25 = vadd.f32 %v1278_v8, %v3788_v31  ;;  %v1363_v34 = vadd.f32 %v1331_v27, %v3749_v40  ;;  %v1470_v57 = vsel %vm1406_vm8, %v1374_v5, %v1438_v51  ;;  %v1454_v63 = vsel %vm1390_vm9, %v3874_v1, %v1422_v38  ;;  %v1717_v38 = vld [vmem:[%s4385_s7 + $0x28] sm:$0xff]  ;;  %v1718_v21 = vld [vmem:[%s4385_s7 + $0x30] sm:$0xff] }
 0x32c   : > { %v1424_v11 = vmul.f32 0.2, %v1360_v10  ;;  %v1425_v13 = vmul.f32 0.2, %v1361_v23  ;;  %v1282_v58 = vrot.slane %v3863_v53, %v3779_v17  ;;  %v1455_v60 = vsel %vm1391_vm10, %v1359_v45, %v1423_v46 }
 0x32d   : > { %2791 = vmatmul.mubr.f32.gmra.mrb[36].mxu1 %v1470_v57  ;;  %vm1392_vm11 = vcmp.gt.f32.partialorder %v1360_v10, 0.0  ;;  %vm1393_vm12 = vcmp.gt.f32.partialorder %v1361_v23, 0.0  ;;  %v1334_v35 = vadd.f32 %v1278_v8, %v3798_v4  ;;  %v1426_v15 = vmul.f32 0.2, %v1362_v36 }
 0x32e   : > { %2767 = vmatmul.mubr.f32.gmra.mrb[22].mxu0 %v1454_v63  ;;  %v1364_v18 = vadd.f32 %v3747_v37, %v1332_v0  ;;  %v1365_v40 = vadd.f32 %v1333_v25, %v3753_v48  ;;  %v1456_v62 = vsel %vm1392_vm11, %v1360_v10, %v1424_v11  ;;  %v1427_v1 = vmul.f32 0.2, %v1363_v34 }
 0x32f   : > { %2769 = vmatprep.mubr.f32.mxu0 %v1455_v60  ;;  %v1335_v19 = vadd.f32 %v1282_v58, %v3788_v31  ;;  %v1457_v2 = vsel %vm1393_vm12, %v1361_v23, %v1425_v13  ;;  %vm1394_vm13 = vcmp.gt.f32.partialorder %v1362_v36, 0.0  ;;  %vm1395_vm14 = vcmp.gt.f32.partialorder %v1363_v34, 0.0 }
 0x330   : > { %v1428_v17 = vmul.f32 0.2, %v1364_v18  ;;  %v1366_v53 = vadd.f32 %v3751_v39, %v1334_v35  ;;  %v1336_v22 = vadd.f32 %v1282_v58, %v3798_v4  ;;  %v1458_v20 = vsel %vm1394_vm13, %v1362_v36, %v1426_v15  ;;  %v1721_v35 = vld [vmem:[%s4385_s7 + $0x48] sm:$0xff] }
 0x331   : > { %v1429_v14 = vmul.f32 0.2, %v1365_v40  ;;  %v1367_v37 = vadd.f32 %v1335_v19, %v3757_v42  ;;  %v1459_v48 = vsel %vm1395_vm14, %v1363_v34, %v1427_v1  ;;  %vm1396_vm15 = vcmp.gt.f32.partialorder %v1364_v18, 0.0  ;;  %v1720_v19 = vld [vmem:[%s4385_s7 + $0x40] sm:$0xff] }
 0x332   : > { %2770 = vmatmul.mubr.f32.gmra.mrb[24].mxu0 %v1456_v62  ;;  %vm1397_vm0 = vcmp.gt.f32.partialorder %v1365_v40, 0.0  ;;  %v1430_v52 = vmul.f32 0.2, %v1366_v53  ;;  %v1368_v26 = vadd.f32 %v3755_v41, %v1336_v22  ;;  %v1460_v43 = vsel %vm1396_vm15, %v1364_v18, %v1428_v17  ;;  %v1712_v41 = vld [vmem:[%s4385_s7] sm:$0xff] }
 0x333   : > { %2772 = vmatprep.mubr.f32.mxu0 %v1457_v2  ;;  %v1431_v44 = vmul.f32 0.2, %v1367_v37  ;;  %v1461_v9 = vsel %vm1397_vm0, %v1365_v40, %v1429_v14  ;;  %vm1398_vm1 = vcmp.gt.f32.partialorder %v1366_v53, 0.0  ;;  %vm1399_vm2 = vcmp.gt.f32.partialorder %v1367_v37, 0.0 }
 0x334   : > { %v1432_v39 = vmul.f32 0.2, %v1368_v26  ;;  %v1462_v30 = vsel %vm1398_vm1, %v1366_v53, %v1430_v52  ;;  %vm1400_vm3 = vcmp.gt.f32.partialorder %v1368_v26, 0.0  ;;  %vm2312_vm4 = vcmask 1041409  }
 0x335   : > { %v1463_v3 = vsel %vm1399_vm2, %v1367_v37, %v1431_v44  ;;  %vm2315_vm5 = vcmask 1042434   ;;  %vm2318_vm6 = vcmask 1043459   ;;  %vm2321_vm7 = vcmask 1044484  }
 0x336   : > { %2773 = vmatmul.mubr.f32.gmra.mrb[26].mxu0 %v1458_v20  ;;  %v1464_v42 = vsel %vm1400_vm3, %v1368_v26, %v1432_v39  ;;  %vm2324_vm8 = vcmask 1045509   ;;  %vm2327_vm9 = vcmask 1046534   ;;  %vm2330_vm10 = vcmask 1047559  }
 0x337   : > { %2775 = vmatprep.mubr.f32.mxu0 %v1459_v48  ;;  %v1739_v48 = vld [vmem:[%s4385_s7 + $0xd8] sm:$0xff] }
 0x33a   : > { %2776 = vmatmul.mubr.f32.gmra.mrb[28].mxu0 %v1460_v43  ;;  %v1738_v43 = vld [vmem:[%s4385_s7 + $0xd0] sm:$0xff] }
 0x33b   : > { %2778 = vmatprep.mubr.f32.mxu0 %v1461_v9 }
 0x33e   : > { %2779 = vmatmul.mubr.f32.gmra.mrb[30].mxu0 %v1462_v30 }
 0x33f   : > { %2781 = vmatprep.mubr.f32.mxu0 %v1463_v3 }
 0x342   : > { %2782 = vmatmul.mubr.f32.gmra.mrb[32].mxu0 %v1464_v42  ;;  %v1723_v42 = vld [vmem:[%s4385_s7 + $0x58] sm:$0xff] }
 0x3e3   : > { %v2747_v24 = vpop.f32.mrb[8].mxu0 }
 0x3e4   : > { %v1745_v55 = vadd.f32 %v2747_v24, %v1713_v16  ;;  %v1553_v28 = vpop.f32.mrb[9].mxu0  ;;  %v1722_v16 = vld [vmem:[%s4385_s7 + $0x50] sm:$0xff] }
 0x3e5   : > { %v1744_v54 = vadd.f32 %v1712_v41, %v1553_v28 }
 0x3e7   : > { %v1776_v45 = vmax.f32 %v1744_v54, %v1745_v55  ;;  %v2750_v49 = vpop.f32.mrb[10].mxu0 }
 0x3e8   : > { %v1747_v47 = vadd.f32 %v2750_v49, %v1715_v59  ;;  %v1563_v5 = vpop.f32.mrb[11].mxu0 }
 0x3e9   : > { %v1777_v32 = vrot.slane %v1776_v45, 4  ;;  %v1746_v12 = vadd.f32 %v1714_v6, %v1563_v5 }
 0x3eb   : > { %v1778_v50 = vmax.f32 %v1776_v45, %v1777_v32  ;;  %v1783_v7 = vmax.f32 %v1746_v12, %v1747_v47 }
 0x3ec   : > { %v2753_v27 = vpop.f32.mrb[12].mxu0 }
 0x3ed   : > { %v1779_v46 = vrot.slane %v1778_v50, 2  ;;  %v1784_v23 = vrot.slane %v1783_v7, 4  ;;  %v3966_v8 = vadd.f32 %v2753_v27, %v1717_v38  ;;  %v1573_v51 = vpop.f32.mrb[13].mxu0 }
 0x3ee   : > { %v3968_v10 = vadd.f32 %v1716_v61, %v1573_v51 }
 0x3ef   : > { %v1780_v56 = vmax.f32 %v1778_v50, %v1779_v46  ;;  %v1785_v29 = vmax.f32 %v1783_v7, %v1784_v23  ;;  %v1741_v50 = vld [vmem:[%s4385_s7 + $0xe8] sm:$0xff]  ;;  %v1740_v46 = vld [vmem:[%s4385_s7 + $0xe0] sm:$0xff] }
 0x3f0   : > { %v1790_v25 = vmax.f32 %v3968_v10, %v3966_v8  ;;  %v2756_v34 = vpop.f32.mrb[14].mxu0 }
 0x3f1   : > { %v1781_v36 = vrot.slane %v1780_v56, 1  ;;  %v1786_v0 = vrot.slane %v1785_v29, 2  ;;  %v3978_v57 = vadd.f32 %v2756_v34, %v1719_v33  ;;  %v1583_v63 = vpop.f32.mrb[15].mxu0 }
 0x3f2   : > { %v1791_v58 = vrot.slane %v1790_v25, 4  ;;  %v3980_v60 = vadd.f32 %v1718_v21, %v1583_v63 }
 0x3f3   : > { %v1782_v11 = vmax.f32 %v1780_v56, %v1781_v36  ;;  %v1787_v13 = vmax.f32 %v1785_v29, %v1786_v0 }
 0x3f4   : > { %v1792_v62 = vmax.f32 %v1790_v25, %v1791_v58  ;;  %v2759_v1 = vpop.f32.mrb[16].mxu0  ;;  %v1797_v2 = vmax.f32 %v3980_v60, %v3978_v57 }
 0x3f5   : > { %v1888_v15 = vsub.f32 %v1744_v54, %v1782_v11  ;;  %v1889_v18 = vsub.f32 %v1745_v55, %v1782_v11  ;;  %v1788_v40 = vrot.slane %v1787_v13, 1  ;;  %v3990_v17 = vadd.f32 %v2759_v1, %v1721_v35  ;;  %v1593_v53 = vpop.f32.mrb[17].mxu0 }
 0x3f6   : > { %v1793_v37 = vrot.slane %v1792_v62, 2  ;;  %v1798_v52 = vrot.slane %v1797_v2, 4  ;;  %v3995_v26 = vadd.f32 %v1720_v19, %v1593_v53 }
 0x3f7   : > { %v1920_v22 = vmul.f32 1.442695, %v1888_v15  ;;  %v1922_v20 = vmul.f32 1.442695, %v1889_v18  ;;  %v1789_v14 = vmax.f32 %v1787_v13, %v1788_v40 }
 0x3f8   : > { %v1794_v39 = vmax.f32 %v1792_v62, %v1793_v37  ;;  %v2786_v30 = vpop.f32.mrb[32].mxu1  ;;  %v1799_v41 = vmax.f32 %v1797_v2, %v1798_v52  ;;  %v1804_v24 = vmax.f32 %v3995_v26, %v3990_v17 }
 0x3f9   : > { %2953 = vpow2.f32 %v1920_v22  ;;  %v1890_v44 = vsub.f32 %v1746_v12, %v1789_v14  ;;  %v1891_v9 = vsub.f32 %v1747_v47, %v1789_v14  ;;  %v2762_v3 = vpop.f32.mrb[18].mxu0  ;;  %v4008_v55 = vadd.f32 %v2786_v30, %v1739_v48  ;;  %v1683_v28 = vpop.f32.mrb[33].mxu1 }
 0x3fa   : > { %2955 = vpow2.f32 %v1922_v20  ;;  %v1603_v54 = vpop.f32.mrb[19].mxu0  ;;  %v1795_v45 = vrot.slane %v1794_v39, 1  ;;  %v4010_v49 = vadd.f32 %v1738_v43, %v1683_v28  ;;  %v1800_v47 = vrot.slane %v1799_v41, 2  ;;  %v1725_v20 = vld [vmem:[%s4385_s7 + $0x68] sm:$0xff] }
 0x3fb   : > { %v1924_v59 = vmul.f32 1.442695, %v1890_v44  ;;  %v1926_v6 = vmul.f32 1.442695, %v1891_v9  ;;  %v1805_v5 = vrot.slane %v1804_v24, 4  ;;  %v4012_v32 = vadd.f32 %v2762_v3, %v1723_v42 }
 0x3fc   : > { %v4014_v12 = vadd.f32 %v1722_v16, %v1603_v54  ;;  %v1796_v7 = vmax.f32 %v1794_v39, %v1795_v45  ;;  %v1867_v38 = vmax.f32 %v4010_v49, %v4008_v55  ;;  %v2789_v61 = vpop.f32.mrb[34].mxu1  ;;  %v1801_v27 = vmax.f32 %v1799_v41, %v1800_v47 }
 0x3fd   : > { %2957 = vpow2.f32 %v1924_v59  ;;  %v2765_v23 = vpop.f32.mrb[20].mxu0  ;;  %v1806_v51 = vmax.f32 %v1804_v24, %v1805_v5  ;;  %v1693_v29 = vpop.f32.mrb[35].mxu1  ;;  %v4030_v25 = vadd.f32 %v2789_v61, %v1741_v50 }
 0x3fe   : > { %2959 = vpow2.f32 %v1926_v6  ;;  %v1811_v56 = vmax.f32 %v4014_v12, %v4012_v32  ;;  %v4026_v33 = vpop.f32.mrb[21].mxu0  ;;  %v1892_v21 = vsub.f32 %v3968_v10, %v1796_v7  ;;  %v1893_v36 = vsub.f32 %v3966_v8, %v1796_v7 }
 0x3ff   : > { %v1868_v0 = vrot.slane %v1867_v38, 4  ;;  %v1802_v34 = vrot.slane %v1801_v27, 1  ;;  %v1807_v63 = vrot.slane %v1806_v51, 2  ;;  %v4032_v13 = vadd.f32 %v1740_v46, %v1693_v29 }
 0x400   : > { %v1812_v11 = vrot.slane %v1811_v56, 4  ;;  %v1928_v58 = vmul.f32 1.442695, %v1892_v21  ;;  %v1930_v35 = vmul.f32 1.442695, %v1893_v36  ;;  %v4034_v18 = vpop.f32.mrb[36].mxu1  ;;  %v4055_v41 = vadd.f32 %v2765_v23, %v1725_v20 }
 0x401   : > { %v1869_v15 = vmax.f32 %v1867_v38, %v1868_v0  ;;  %v4036_v40 = vpop.f32.mrb[22].mxu0  ;;  %v1803_v62 = vmax.f32 %v1801_v27, %v1802_v34  ;;  %v1808_v1 = vmax.f32 %v1806_v51, %v1807_v63  ;;  %v4040_v8 = vmax.f32 %v4032_v13, %v4030_v25  ;;  %v4042_v19 = vpop.f32.mrb[37].mxu1 }
 0x402   : > { %v1813_v10 = vmax.f32 %v1811_v56, %v1812_v11  ;;  %v4044_v2 = vpop.f32.mrb[23].mxu0  ;;  %2961 = vpow2.f32 %v1928_v58 }
 0x403   : > { %v2954_v53 = vpop.eup %2953  ;;  %v1870_v22 = vrot.slane %v1869_v15, 2  ;;  %2963 = vpow2.f32 %v1930_v35  ;;  %v1894_v48 = vsub.f32 %v3980_v60, %v1803_v62  ;;  %v1895_v52 = vsub.f32 %v3978_v57, %v1803_v62 }
 0x404   : > { %v2956_v14 = vpop.eup %2955  ;;  %v2096_v37 = vmul.f32 %v2954_v53, %v3788_v31  ;;  %v1809_v9 = vrot.slane %v1808_v1, 1  ;;  %v1814_v16 = vrot.slane %v1813_v10, 2  ;;  %v1875_v5 = vrot.slane %v4040_v8, 4 }
 0x405   : > { %v1984_v43 = vadd.f32 %v2956_v14, %v2954_v53  ;;  %v2097_v44 = vmul.f32 %v2956_v14, %v3798_v4  ;;  %v1871_v39 = vmax.f32 %v1869_v15, %v1870_v22  ;;  %v4053_v30 = vpop.f32.mrb[24].mxu0  ;;  %v1932_v3 = vmul.f32 1.442695, %v1894_v48  ;;  %v1724_v14 = vld [vmem:[%s4385_s7 + $0x60] sm:$0xff] }
 0x406   : > { %v1934_v42 = vmul.f32 1.442695, %v1895_v52  ;;  %v1810_v59 = vmax.f32 %v1808_v1, %v1809_v9  ;;  %v4057_v60 = vpop.f32.mrb[25].mxu0  ;;  %v1815_v47 = vmax.f32 %v1813_v10, %v1814_v16  ;;  %v4080_v16 = vadd.f32 %v1724_v14, %v4026_v33 }
 0x407   : > { %v2958_v24 = vpop.eup %2957  ;;  %v1985_v28 = vrot.slane %v1984_v43, 4  ;;  %v2128_v54 = vadd.f32 %v2097_v44, %v2096_v37  ;;  %v1872_v6 = vrot.slane %v1871_v39, 1  ;;  %2965 = vpow2.f32 %v1932_v3 }
 0x408   : > { %v2960_v57 = vpop.eup %2959  ;;  %v2098_v45 = vmul.f32 %v2958_v24, %v3788_v31  ;;  %2967 = vpow2.f32 %v1934_v42  ;;  %v1896_v23 = vsub.f32 %v3995_v26, %v1810_v59  ;;  %v1897_v27 = vsub.f32 %v3990_v17, %v1810_v59 }
 0x409   : > { %v1986_v50 = vadd.f32 %v1985_v28, %v1984_v43  ;;  %v2129_v7 = vrot.slane %v2128_v54, 4  ;;  %v1991_v38 = vadd.f32 %v2960_v57, %v2958_v24  ;;  %v2099_v61 = vmul.f32 %v2960_v57, %v3798_v4  ;;  %v4062_v46 = vpop.f32.mrb[26].mxu0 }
 0x40a   : > { %v1873_v51 = vmax.f32 %v1871_v39, %v1872_v6  ;;  %v4066_v56 = vpop.f32.mrb[27].mxu0  ;;  %v1936_v34 = vmul.f32 1.442695, %v1896_v23  ;;  %v1938_v63 = vmul.f32 1.442695, %v1897_v27  ;;  %v1816_v9 = vrot.slane %v1815_v47, 1 }
 0x40b   : > { %v1987_v29 = vrot.slane %v1986_v50, 2  ;;  %v2130_v21 = vadd.f32 %v2129_v7, %v2128_v54  ;;  %v1992_v36 = vrot.slane %v1991_v38, 4  ;;  %v2135_v0 = vadd.f32 %v2099_v61, %v2098_v45 }
 0x40c   : > { %v1914_v11 = vsub.f32 %v4010_v49, %v1873_v51  ;;  %v1915_v58 = vsub.f32 %v4008_v55, %v1873_v51  ;;  %v2962_v35 = vpop.eup %2961  ;;  %2969 = vpow2.f32 %v1936_v34  ;;  %v1817_v6 = vmax.f32 %v1815_v47, %v1816_v9 }
 0x40d   : > { %v1988_v15 = vadd.f32 %v1987_v29, %v1986_v50  ;;  %v2131_v62 = vrot.slane %v2130_v21, 2  ;;  %v1993_v1 = vadd.f32 %v1992_v36, %v1991_v38  ;;  %v2136_v26 = vrot.slane %v2135_v0, 4  ;;  %v4070_v10 = vpop.f32.mrb[28].mxu0  ;;  %v2964_v17 = vpop.eup %2963 }
 0x40e   : > { %v2100_v53 = vmul.f32 %v2962_v35, %v3788_v31  ;;  %v1972_v22 = vmul.f32 1.442695, %v1914_v11  ;;  %v1974_v20 = vmul.f32 1.442695, %v1915_v58  ;;  %v4076_v49 = vpop.f32.mrb[29].mxu0  ;;  %v1998_v43 = vadd.f32 %v2964_v17, %v2962_v35 }
 0x40f   : > { %v1989_v55 = vrot.slane %v1988_v15, 1  ;;  %v2132_v37 = vadd.f32 %v2131_v62, %v2130_v21  ;;  %v1994_v48 = vrot.slane %v1993_v1, 2  ;;  %v2137_v52 = vadd.f32 %v2136_v26, %v2135_v0 }
 0x410   : > { %v2101_v44 = vmul.f32 %v2964_v17, %v3798_v4  ;;  %2971 = vpow2.f32 %v1938_v63  ;;  %v1999_v54 = vrot.slane %v1998_v43, 4  ;;  %v1876_v7 = vmax.f32 %v4040_v8, %v1875_v5 }
 0x411   : > { %v1990_v39 = vadd.f32 %v1989_v55, %v1988_v15  ;;  %v1995_v3 = vadd.f32 %v1994_v48, %v1993_v1  ;;  %v2138_v42 = vrot.slane %v2137_v52, 2  ;;  %v4082_v24 = vpop.f32.mrb[30].mxu0  ;;  %v2966_v28 = vpop.eup %2965  ;;  %2973 = vpow2.f32 %v1972_v22 }
 0x412   : > { %v2142_v59 = vadd.f32 %v2101_v44, %v2100_v53  ;;  %v4084_v57 = vpop.f32.mrb[31].mxu0  ;;  %v2133_v45 = vrot.slane %v2132_v37, 1  ;;  %v2968_v38 = vpop.eup %2967  ;;  %v2000_v61 = vadd.f32 %v1999_v54, %v1998_v43  ;;  %v2102_v33 = vmul.f32 %v2966_v28, %v3788_v31 }
 0x413   : > { %2975 = vrcp.f32 %v1990_v39  ;;  %v1996_v50 = vrot.slane %v1995_v3, 1  ;;  %v2139_v51 = vadd.f32 %v2138_v42, %v2137_v52  ;;  %v2005_v29 = vadd.f32 %v2968_v38, %v2966_v28 }
 0x414   : > { %v2143_v23 = vrot.slane %v2142_v59, 4  ;;  %2977 = vpow2.f32 %v1974_v20  ;;  %v2103_v21 = vmul.f32 %v2968_v38, %v3798_v4  ;;  %v2001_v47 = vrot.slane %v2000_v61, 2 }
 0x415   : > { %v1997_v27 = vadd.f32 %v1996_v50, %v1995_v3  ;;  %v4089_v36 = vpop.f32.mrb[32].mxu0  ;;  %v1898_v34 = vsub.f32 %v4014_v12, %v1817_v6  ;;  %v1899_v63 = vsub.f32 %v4012_v32, %v1817_v6  ;;  %v2134_v5 = vadd.f32 %v2133_v45, %v2132_v37 }
 0x416   : > { %v2144_v0 = vadd.f32 %v2143_v23, %v2142_v59  ;;  %v4093_v8 = vpop.f32.mrb[33].mxu0  ;;  %v2006_v11 = vrot.slane %v2005_v29, 4  ;;  %v2149_v58 = vadd.f32 %v2103_v21, %v2102_v33  ;;  %v2970_v35 = vpop.eup %2969  ;;  %v2002_v15 = vadd.f32 %v2001_v47, %v2000_v61 }
 0x417   : > { %2979 = vrcp.f32 %v1997_v27  ;;  %v1940_v1 = vmul.f32 1.442695, %v1898_v34  ;;  %v1942_v26 = vmul.f32 1.442695, %v1899_v63  ;;  %v2104_v22 = vmul.f32 %v2970_v35, %v3788_v31 }
 0x418   : > { %v2145_v62 = vrot.slane %v2144_v0, 2  ;;  %v2007_v17 = vadd.f32 %v2006_v11, %v2005_v29  ;;  %v2150_v53 = vrot.slane %v2149_v58, 4  ;;  %v1877_v20 = vrot.slane %v1876_v7, 2 }
 0x419   : > { %v2140_v12 = vrot.slane %v2139_v51, 1  ;;  %v2003_v55 = vrot.slane %v2002_v15, 1  ;;  %2981 = vpow2.f32 %v1940_v1  ;;  %v4098_v32 = vmax.f32 %v4080_v16, %v4055_v41 }
 0x41a   : > { %v2972_v14 = vpop.eup %2971  ;;  %v2008_v37 = vrot.slane %v2007_v17, 2  ;;  %v2151_v48 = vadd.f32 %v2150_v53, %v2149_v58  ;;  %v2146_v39 = vadd.f32 %v2145_v62, %v2144_v0  ;;  %2983 = vpow2.f32 %v1942_v26 }
 0x41b   : > { %v2012_v52 = vadd.f32 %v2972_v14, %v2970_v35  ;;  %v2105_v43 = vmul.f32 %v2972_v14, %v3798_v4  ;;  %v2974_v44 = vpop.eup %2973  ;;  %v2004_v9 = vadd.f32 %v2003_v55, %v2002_v15  ;;  %v1878_v3 = vmax.f32 %v1876_v7, %v1877_v20  ;;  %v1743_v7 = vld [vmem:[%s4385_s7 + $0xf8] sm:$0xff] }
 0x41c   : > { %v2009_v28 = vadd.f32 %v2008_v37, %v2007_v17  ;;  %v2152_v54 = vrot.slane %v2151_v48, 2  ;;  %v2122_v38 = vmul.f32 %v2974_v44, %v3788_v31  ;;  %v2141_v61 = vadd.f32 %v2140_v12, %v2139_v51 }
 0x41d   : > { %v2976_v42 = vpop.eup %2975  ;;  %v2013_v59 = vrot.slane %v2012_v52, 4  ;;  %v2156_v6 = vadd.f32 %v2105_v43, %v2104_v22  ;;  %2985 = vrcp.f32 %v2004_v9  ;;  %v2147_v29 = vrot.slane %v2146_v39, 1  ;;  %v4112_v22 = vld [vmem:[%s4384_s6] ss:$0 sm:$0xff] }
 0x41e   : > { %v2978_v45 = vpop.eup %2977  ;;  %v2256_v50 = vmul.f32 %v2976_v42, %v2134_v5  ;;  %v2010_v23 = vrot.slane %v2009_v28, 1  ;;  %v1879_v0 = vrot.slane %v1878_v3, 1  ;;  %v2153_v11 = vadd.f32 %v2152_v54, %v2151_v48 }
 0x41f   : > { %v2014_v33 = vadd.f32 %v2013_v59, %v2012_v52  ;;  %v2157_v27 = vrot.slane %v2156_v6, 4  ;;  %v2075_v21 = vadd.f32 %v2978_v45, %v2974_v44  ;;  %v2123_v47 = vmul.f32 %v2978_v45, %v3798_v4 }
 0x420   : > { %v2011_v63 = vadd.f32 %v2010_v23, %v2009_v28  ;;  %v1880_v62 = vmax.f32 %v1878_v3, %v1879_v0  ;;  %v4107_v17 = vadd.f32 %v4034_v18, %v1743_v7  ;;  %v2148_v20 = vadd.f32 %v2147_v29, %v2146_v39 }
 0x421   : > { %v2980_v34 = vpop.eup %2979  ;;  %v2015_v5 = vrot.slane %v2014_v33, 2  ;;  %v2158_v58 = vadd.f32 %v2157_v27, %v2156_v6  ;;  %v2076_v15 = vrot.slane %v2075_v21, 4  ;;  %v2219_v51 = vadd.f32 %v2123_v47, %v2122_v38  ;;  %v1727_v47 = vld [vmem:[%s4385_s7 + $0x78] sm:$0xff] }
 0x422   : > { %v2257_v35 = vmul.f32 %v2980_v34, %v2141_v61  ;;  %2987 = vrcp.f32 %v2011_v63  ;;  %v1916_v55 = vsub.f32 %v4032_v13, %v1880_v62  ;;  %v2154_v48 = vrot.slane %v2153_v11, 1 }
 0x423   : > { %v2016_v1 = vadd.f32 %v2015_v5, %v2014_v33  ;;  %v2159_v26 = vrot.slane %v2158_v58, 2  ;;  %v2982_v53 = vpop.eup %2981  ;;  %v2077_v14 = vadd.f32 %v2076_v15, %v2075_v21  ;;  %v2220_v12 = vrot.slane %v2219_v51, 4 }
 0x424   : > { %v4116_v37 = vadd.f32 %v4112_v22, %v2257_v35  ;;  %v1917_v43 = vsub.f32 %v4030_v25, %v1880_v62  ;;  %v2984_v18 = vpop.eup %2983  ;;  %v2106_v3 = vmul.f32 %v2982_v53, %v3788_v31  ;;  %v1976_v42 = vmul.f32 1.442695, %v1916_v55  ;;  %v1742_v25 = vld [vmem:[%s4385_s7 + $0xf0] sm:$0xff] }
 0x425   : > { %v2017_v52 = vrot.slane %v2016_v1, 1  ;;  %v2078_v44 = vrot.slane %v2077_v14, 2  ;;  %v2221_v9 = vadd.f32 %v2220_v12, %v2219_v51  ;;  %v2160_v54 = vadd.f32 %v2159_v26, %v2158_v58 }
 0x426   : > { %v2019_v39 = vadd.f32 %v2984_v18, %v2982_v53  ;;  %v2107_v59 = vmul.f32 %v2984_v18, %v3798_v4  ;;  %2989 = vpow2.f32 %v1976_v42  ;;  %v1978_v38 = vmul.f32 1.442695, %v1917_v43  ;;  %v1728_v53 = vld [vmem:[%s4385_s7 + $0x80] sm:$0xff] }
 0x427   : > { %v2018_v28 = vadd.f32 %v2017_v52, %v2016_v1  ;;  %v2986_v6 = vpop.eup %2985  ;;  %v2079_v13 = vadd.f32 %v2078_v44, %v2077_v14  ;;  %v2222_v45 = vrot.slane %v2221_v9, 2  ;;  %v4125_v61 = vadd.f32 %v4112_v22, %v2256_v50 }
 0x428   : > { %v2258_v23 = vmul.f32 %v2986_v6, %v2148_v20  ;;  %v2020_v33 = vrot.slane %v2019_v39, 4  ;;  %v2155_v27 = vadd.f32 %v2154_v48, %v2153_v11  ;;  %v2163_v21 = vadd.f32 %v2107_v59, %v2106_v3  ;;  %v1726_v11 = vld [vmem:[%s4385_s7 + $0x70] sm:$0xff] }
 0x429   : > { %2991 = vrcp.f32 %v2018_v28  ;;  %v2080_v29 = vrot.slane %v2079_v13, 1  ;;  %v2311_v0 = vrot.slane %v4116_v37, 7  ;;  %v1819_v34 = vrot.slane %v4098_v32, 4 }
 0x42a   : > { %2993 = vpow2.f32 %v1978_v38  ;;  %v2021_v7 = vadd.f32 %v2020_v33, %v2019_v39  ;;  %v4133_v63 = vadd.f32 %v1742_v25, %v4042_v19  ;;  %v2161_v50 = vrot.slane %v2160_v54, 1  ;;  %v1729_v19 = vld [vmem:[%s4385_s7 + $0x88] sm:$0xff] }
 0x42b   : > { %v2081_v5 = vadd.f32 %v2080_v29, %v2079_v13  ;;  %v2223_v58 = vadd.f32 %v2222_v45, %v2221_v9  ;;  %v2164_v35 = vrot.slane %v2163_v21, 4  ;;  %v1820_v62 = vmax.f32 %v4098_v32, %v1819_v34 }
 0x42c   : > { %v2988_v15 = vpop.eup %2987  ;;  %v2022_v51 = vrot.slane %v2021_v7, 2  ;;  %v1881_v1 = vmax.f32 %v4133_v63, %v4107_v17  ;;  %v4142_v26 = vadd.f32 %v4036_v40, %v1727_v47  ;;  %v4151_v20 = vadd.f32 %v4112_v22, %v2258_v23 }
 0x42d   : > { %v2259_v14 = vmul.f32 %v2988_v15, %v2155_v27  ;;  %2995 = vrcp.f32 %v2081_v5  ;;  %v2165_v32 = vadd.f32 %v2164_v35, %v2163_v21  ;;  %v1821_v55 = vrot.slane %v1820_v62, 2 }
 0x42e   : > { %v2023_v12 = vadd.f32 %v2022_v51, %v2021_v7  ;;  %v1882_v48 = vrot.slane %v1881_v1, 4  ;;  %v4154_v40 = vadd.f32 %v1726_v11, %v4044_v2  ;;  %v2162_v52 = vadd.f32 %v2161_v50, %v2160_v54 }
 0x42f   : > { %v2166_v43 = vrot.slane %v2165_v32, 2  ;;  %v4157_v18 = vadd.f32 %v4053_v30, %v1729_v19  ;;  %v4160_v44 = vadd.f32 %v1728_v53, %v4057_v60  ;;  %v1822_v3 = vmax.f32 %v1820_v62, %v1821_v55 }
 0x430   : > { %v2024_v9 = vrot.slane %v2023_v12, 1  ;;  %v1883_v42 = vmax.f32 %v1881_v1, %v1882_v48  ;;  %v1825_v28 = vmax.f32 %v4154_v40, %v4142_v26  ;;  %v2990_v39 = vpop.eup %2989  ;;  %v2314_v59 = vrot.slane %v4151_v20, 6 }
 0x431   : > { %v4166_v2 = vadd.f32 %v4112_v22, %v2259_v14  ;;  %v2224_v54 = vrot.slane %v2223_v58, 1  ;;  %v1832_v30 = vmax.f32 %v4160_v44, %v4157_v18  ;;  %v2124_v60 = vmul.f32 %v2990_v39, %v3788_v31 }
 0x432   : > { %v2025_v13 = vadd.f32 %v2024_v9, %v2023_v12  ;;  %v1823_v45 = vrot.slane %v1822_v3, 1  ;;  %v1884_v38 = vrot.slane %v1883_v42, 2  ;;  %v2167_v33 = vadd.f32 %v2166_v43, %v2165_v32  ;;  %v1731_v12 = vld [vmem:[%s4385_s7 + $0x98] sm:$0xff] }
 0x433   : > { %v2992_v6 = vpop.eup %2991  ;;  %v1826_v27 = vrot.slane %v1825_v28, 4  ;;  %v1833_v29 = vrot.slane %v1832_v30, 4  ;;  %v2317_v34 = vrot.slane %v4166_v2, 5  ;;  %v2225_v50 = vadd.f32 %v2224_v54, %v2223_v58 }
 0x434   : > { %v2994_v25 = vpop.eup %2993  ;;  %v2260_v23 = vmul.f32 %v2992_v6, %v2162_v52  ;;  %2997 = vrcp.f32 %v2025_v13  ;;  %v1824_v7 = vmax.f32 %v1822_v3, %v1823_v45  ;;  %v1885_v5 = vmax.f32 %v1883_v42, %v1884_v38 }
 0x435   : > { %v2082_v21 = vadd.f32 %v2994_v25, %v2990_v39  ;;  %v2125_v47 = vmul.f32 %v2994_v25, %v3798_v4  ;;  %v1827_v35 = vmax.f32 %v1825_v28, %v1826_v27  ;;  %v2168_v19 = vrot.slane %v2167_v33, 1 }
 0x436   : > { %v1900_v51 = vsub.f32 %v4080_v16, %v1824_v7  ;;  %v1901_v62 = vsub.f32 %v4055_v41, %v1824_v7  ;;  %v1886_v53 = vrot.slane %v1885_v5, 1  ;;  %v1834_v32 = vmax.f32 %v1832_v30, %v1833_v29  ;;  %v1730_v41 = vld [vmem:[%s4385_s7 + $0x90] sm:$0xff] }
 0x437   : > { %v2083_v11 = vrot.slane %v2082_v21, 4  ;;  %v2226_v15 = vadd.f32 %v2125_v47, %v2124_v60  ;;  %v2996_v1 = vpop.eup %2995  ;;  %v1828_v14 = vrot.slane %v1827_v35, 2  ;;  %v4184_v39 = vadd.f32 %v4062_v46, %v1731_v12  ;;  %v1737_v12 = vld [vmem:[%s4385_s7 + $0xc8] sm:$0xff] }
 0x438   : > { %v4178_v55 = vmul.f32 %v2996_v1, %v2225_v50  ;;  %v1944_v52 = vmul.f32 1.442695, %v1900_v51  ;;  %v1946_v43 = vmul.f32 1.442695, %v1901_v62  ;;  %v1887_v9 = vmax.f32 %v1885_v5, %v1886_v53  ;;  %v1732_v51 = vld [vmem:[%s4385_s7 + $0xa0] sm:$0xff]  ;;  %v1735_v62 = vld [vmem:[%s4385_s7 + $0xb8] sm:$0xff] }
 0x439   : > { %v2084_v58 = vadd.f32 %v2083_v11, %v2082_v21  ;;  %v2227_v48 = vrot.slane %v2226_v15, 4  ;;  %v1829_v3 = vmax.f32 %v1827_v35, %v1828_v14  ;;  %v1835_v16 = vrot.slane %v1834_v32, 2 }
 0x43a   : > { %2999 = vpow2.f32 %v1944_v52  ;;  %v1918_v54 = vsub.f32 %v4133_v63, %v1887_v9  ;;  %v1919_v30 = vsub.f32 %v4107_v17, %v1887_v9  ;;  %v4189_v38 = vadd.f32 %v1730_v41, %v4066_v56  ;;  %v1733_v17 = vld [vmem:[%s4385_s7 + $0xa8] sm:$0xff] }
 0x43b   : > { %v2085_v42 = vrot.slane %v2084_v58, 2  ;;  %v2228_v28 = vadd.f32 %v2227_v48, %v2226_v15  ;;  %3001 = vpow2.f32 %v1946_v43  ;;  %v1830_v6 = vrot.slane %v1829_v3, 1 }
 0x43c   : > { %v1836_v45 = vmax.f32 %v1834_v32, %v1835_v16  ;;  %v2169_v25 = vadd.f32 %v2168_v19, %v2167_v33  ;;  %v1980_v27 = vmul.f32 1.442695, %v1918_v54  ;;  %v1982_v29 = vmul.f32 1.442695, %v1919_v30 }
 0x43d   : > { %v2086_v13 = vadd.f32 %v2085_v42, %v2084_v58  ;;  %v2229_v60 = vrot.slane %v2228_v28, 2  ;;  %v1831_v21 = vmax.f32 %v1829_v3, %v1830_v6  ;;  %v1839_v63 = vmax.f32 %v4189_v38, %v4184_v39 }
 0x43e   : > { %v2998_v47 = vpop.eup %2997  ;;  %v1837_v50 = vrot.slane %v1836_v45, 1  ;;  %3003 = vpow2.f32 %v1980_v27  ;;  %v4201_v35 = vadd.f32 %v4112_v22, %v2260_v23  ;;  %v4221_v48 = vadd.f32 %v1732_v51, %v4076_v49 }
 0x43f   : > { %v2087_v46 = vrot.slane %v2086_v13, 1  ;;  %v2230_v7 = vadd.f32 %v2229_v60, %v2228_v28  ;;  %v4196_v5 = vmul.f32 %v2998_v47, %v2169_v25  ;;  %v1902_v56 = vsub.f32 %v4154_v40, %v1831_v21 }
 0x440   : > { %v1903_v33 = vsub.f32 %v4142_v26, %v1831_v21  ;;  %3005 = vpow2.f32 %v1982_v29  ;;  %v1838_v15 = vmax.f32 %v1836_v45, %v1837_v50  ;;  %v1840_v53 = vrot.slane %v1839_v63, 4  ;;  %v1734_v26 = vld [vmem:[%s4385_s7 + $0xb0] sm:$0xff] }
 0x441   : > { %v2088_v11 = vadd.f32 %v2087_v46, %v2086_v13  ;;  %v1948_v1 = vmul.f32 1.442695, %v1902_v56  ;;  %v4210_v40 = vadd.f32 %v4070_v10, %v1733_v17  ;;  %v2231_v23 = vrot.slane %v2230_v7, 1 }
 0x442   : > { %v1950_v19 = vmul.f32 1.442695, %v1903_v33  ;;  %v1904_v14 = vsub.f32 %v4160_v44, %v1838_v15  ;;  %v1905_v32 = vsub.f32 %v4157_v18, %v1838_v15  ;;  %v1841_v58 = vmax.f32 %v1839_v63, %v1840_v53  ;;  %v1736_v18 = vld [vmem:[%s4385_s7 + $0xc0] sm:$0xff] }
 0x443   : > { %3007 = vrcp.f32 %v2088_v11  ;;  %v4224_v10 = vadd.f32 %v4082_v24, %v1735_v62  ;;  %v4227_v44 = vadd.f32 %v1734_v26, %v4084_v57  ;;  %v1846_v49 = vmax.f32 %v4221_v48, %v4210_v40 }
 0x444   : > { %3009 = vpow2.f32 %v1948_v1  ;;  %v3000_v52 = vpop.eup %2999  ;;  %v1952_v43 = vmul.f32 1.442695, %v1904_v14  ;;  %v1954_v9 = vmul.f32 1.442695, %v1905_v32  ;;  %v1842_v41 = vrot.slane %v1841_v58, 2 }
 0x445   : > { %3011 = vpow2.f32 %v1950_v19  ;;  %v3002_v3 = vpop.eup %3001  ;;  %v2108_v16 = vmul.f32 %v3000_v52, %v3788_v31  ;;  %v4236_v24 = vadd.f32 %v4089_v36, %v1737_v12  ;;  %v1853_v57 = vmax.f32 %v4227_v44, %v4224_v10 }
 0x446   : > { %v2026_v42 = vadd.f32 %v3002_v3, %v3000_v52  ;;  %v2109_v28 = vmul.f32 %v3002_v3, %v3798_v4  ;;  %3013 = vpow2.f32 %v1952_v43  ;;  %v1843_v54 = vmax.f32 %v1841_v58, %v1842_v41 }
 0x447   : > { %3015 = vpow2.f32 %v1954_v9  ;;  %v1847_v30 = vrot.slane %v1846_v49, 4  ;;  %v4242_v6 = vadd.f32 %v1736_v18, %v4093_v8  ;;  %v1854_v45 = vrot.slane %v1853_v57, 4 }
 0x448   : > { %v2027_v13 = vrot.slane %v2026_v42, 4  ;;  %v2170_v60 = vadd.f32 %v2109_v28, %v2108_v16  ;;  %v2313_v36 = vsel %vm2312_vm4, %v2311_v0, %v4125_v61  ;;  %v3004_v25 = vpop.eup %3003  ;;  %v1844_v27 = vrot.slane %v1843_v54, 1 }
 0x449   : > { %v1848_v29 = vmax.f32 %v1846_v49, %v1847_v30  ;;  %v4250_v21 = vmax.f32 %v4242_v6, %v4236_v24  ;;  %v4255_v8 = vsel %vm2315_vm5, %v2314_v59, %v2313_v36  ;;  %v2320_v46 = vrot.slane %v4201_v35, 4 }
 0x44a   : > { %v3006_v47 = vpop.eup %3005  ;;  %v2028_v50 = vadd.f32 %v2027_v13, %v2026_v42  ;;  %v2171_v63 = vrot.slane %v2170_v60, 4  ;;  %v2126_v37 = vmul.f32 %v3004_v25, %v3788_v31  ;;  %v2232_v61 = vadd.f32 %v2231_v23, %v2230_v7 }
 0x44b   : > { %v2089_v0 = vadd.f32 %v3006_v47, %v3004_v25  ;;  %v2127_v17 = vmul.f32 %v3006_v47, %v3798_v4  ;;  %v1845_v56 = vmax.f32 %v1843_v54, %v1844_v27  ;;  %v1849_v51 = vrot.slane %v1848_v29, 2 }
 0x44c   : > { %v2029_v11 = vrot.slane %v2028_v50, 2  ;;  %v2172_v15 = vadd.f32 %v2171_v63, %v2170_v60  ;;  %v4260_v20 = vmax.f32 %v1853_v57, %v1854_v45  ;;  %v1861_v41 = vrot.slane %v4250_v21, 4 }
 0x44d   : > { %v3008_v33 = vpop.eup %3007  ;;  %v2090_v1 = vrot.slane %v2089_v0, 4  ;;  %v2233_v19 = vadd.f32 %v2127_v17, %v2126_v37  ;;  %v1906_v53 = vsub.f32 %v4189_v38, %v1845_v56  ;;  %v1907_v32 = vsub.f32 %v4184_v39, %v1845_v56 }
 0x44e   : > { %v3010_v59 = vpop.eup %3009  ;;  %v4262_v62 = vmul.f32 %v3008_v33, %v2232_v61  ;;  %v2030_v14 = vadd.f32 %v2029_v11, %v2028_v50  ;;  %v2173_v7 = vrot.slane %v2172_v15, 2  ;;  %v1856_v16 = vrot.slane %v4260_v20, 2 }
 0x44f   : > { %v3012_v26 = vpop.eup %3011  ;;  %v2110_v23 = vmul.f32 %v3010_v59, %v3788_v31  ;;  %v2091_v12 = vadd.f32 %v2090_v1, %v2089_v0  ;;  %v2234_v58 = vrot.slane %v2233_v19, 4  ;;  %v1956_v13 = vmul.f32 1.442695, %v1906_v53 }
 0x450   : > { %v2033_v52 = vadd.f32 %v3012_v26, %v3010_v59  ;;  %v2111_v43 = vmul.f32 %v3012_v26, %v3798_v4  ;;  %v3014_v9 = vpop.eup %3013  ;;  %v2031_v18 = vrot.slane %v2030_v14, 1  ;;  %v2174_v3 = vadd.f32 %v2173_v7, %v2172_v15 }
 0x451   : > { %v3016_v38 = vpop.eup %3015  ;;  %v2092_v49 = vrot.slane %v2091_v12, 2  ;;  %v2235_v42 = vadd.f32 %v2234_v58, %v2233_v19  ;;  %v2112_v39 = vmul.f32 %v3014_v9, %v3788_v31  ;;  %v1958_v50 = vmul.f32 1.442695, %v1907_v32 }
 0x452   : > { %v2034_v28 = vrot.slane %v2033_v52, 4  ;;  %v2177_v57 = vadd.f32 %v2111_v43, %v2110_v23  ;;  %v2032_v54 = vadd.f32 %v2031_v18, %v2030_v14  ;;  %v2040_v30 = vadd.f32 %v3016_v38, %v3014_v9 }
 0x453   : > { %v2093_v60 = vadd.f32 %v2092_v49, %v2091_v12  ;;  %v2236_v45 = vrot.slane %v2235_v42, 2  ;;  %v2113_v47 = vmul.f32 %v3016_v38, %v3798_v4  ;;  %v1850_v33 = vmax.f32 %v1848_v29, %v1849_v51 }
 0x454   : > { %v2035_v36 = vadd.f32 %v2034_v28, %v2033_v52  ;;  %v2178_v25 = vrot.slane %v2177_v57, 4  ;;  %3017 = vrcp.f32 %v2032_v54  ;;  %v2041_v27 = vrot.slane %v2040_v30, 4 }
 0x455   : > { %v2094_v63 = vrot.slane %v2093_v60, 1  ;;  %v2237_v37 = vadd.f32 %v2236_v45, %v2235_v42  ;;  %v2184_v56 = vadd.f32 %v2113_v47, %v2112_v39  ;;  %3019 = vpow2.f32 %v1956_v13 }
 0x456   : > { %v2036_v61 = vrot.slane %v2035_v36, 2  ;;  %v2179_v0 = vadd.f32 %v2178_v25, %v2177_v57  ;;  %v2042_v17 = vadd.f32 %v2041_v27, %v2040_v30  ;;  %v2175_v11 = vrot.slane %v2174_v3, 1 }
 0x457   : > { %v2095_v15 = vadd.f32 %v2094_v63, %v2093_v60  ;;  %v2185_v53 = vrot.slane %v2184_v56, 4  ;;  %3021 = vpow2.f32 %v1958_v50  ;;  %v1851_v26 = vrot.slane %v1850_v33, 1 }
 0x458   : > { %v2037_v59 = vadd.f32 %v2036_v61, %v2035_v36  ;;  %v2180_v1 = vrot.slane %v2179_v0, 2  ;;  %v2043_v19 = vrot.slane %v2042_v17, 2  ;;  %v2284_v14 = vadd.f32 %v4112_v22, %v4196_v5 }
 0x459   : > { %v2238_v7 = vrot.slane %v2237_v37, 1  ;;  %3023 = vrcp.f32 %v2095_v15  ;;  %v2186_v12 = vadd.f32 %v2185_v53, %v2184_v56  ;;  %v1852_v58 = vmax.f32 %v1850_v33, %v1851_v26 }
 0x45a   : > { %v2038_v23 = vrot.slane %v2037_v59, 1  ;;  %v2044_v32 = vadd.f32 %v2043_v19, %v2042_v17  ;;  %v1857_v29 = vmax.f32 %v4260_v20, %v1856_v16  ;;  %v2176_v51 = vadd.f32 %v2175_v11, %v2174_v3 }
 0x45b   : > { %v2181_v43 = vadd.f32 %v2180_v1, %v2179_v0  ;;  %v1862_v9 = vmax.f32 %v4250_v21, %v1861_v41  ;;  %v2187_v38 = vrot.slane %v2186_v12, 2  ;;  %v1908_v49 = vsub.f32 %v4221_v48, %v1852_v58 }
 0x45c   : > { %v2039_v52 = vadd.f32 %v2038_v23, %v2037_v59  ;;  %v2045_v18 = vrot.slane %v2044_v32, 1  ;;  %v1909_v5 = vsub.f32 %v4210_v40, %v1852_v58  ;;  %v2239_v42 = vadd.f32 %v2238_v7, %v2237_v37 }
 0x45d   : > { %v1858_v28 = vrot.slane %v1857_v29, 1  ;;  %v1863_v57 = vrot.slane %v1862_v9, 2  ;;  %v2188_v39 = vadd.f32 %v2187_v38, %v2186_v12  ;;  %v1960_v13 = vmul.f32 1.442695, %v1908_v49 }
 0x45e   : > { %3025 = vrcp.f32 %v2039_v52  ;;  %v3018_v54 = vpop.eup %3017  ;;  %v2046_v30 = vadd.f32 %v2045_v18, %v2044_v32  ;;  %v1962_v20 = vmul.f32 1.442695, %v1909_v5  ;;  %v2319_v21 = vsel %vm2318_vm6, %v2317_v34, %v4255_v8 }
 0x45f   : > { %v2262_v3 = vmul.f32 %v3018_v54, %v2176_v51  ;;  %v1859_v16 = vmax.f32 %v1857_v29, %v1858_v28  ;;  %v1864_v60 = vmax.f32 %v1862_v9, %v1863_v57  ;;  %v3020_v48 = vpop.eup %3019  ;;  %v2182_v41 = vrot.slane %v2181_v43, 1 }
 0x460   : > { %3027 = vrcp.f32 %v2046_v30  ;;  %v2322_v40 = vsel %vm2321_vm7, %v2320_v46, %v2319_v21  ;;  %v2323_v45 = vrot.slane %v2284_v14, 3  ;;  %v2114_v36 = vmul.f32 %v3020_v48, %v3788_v31 }
 0x461   : > { %3029 = vpow2.f32 %v1960_v13  ;;  %v1910_v25 = vsub.f32 %v4227_v44, %v1859_v16  ;;  %v1911_v27 = vsub.f32 %v4224_v10, %v1859_v16  ;;  %v3022_v47 = vpop.eup %3021  ;;  %v2189_v50 = vrot.slane %v2188_v39, 1 }
 0x462   : > { %3031 = vpow2.f32 %v1962_v20  ;;  %v1865_v2 = vrot.slane %v1864_v60, 1  ;;  %v2285_v34 = vadd.f32 %v4112_v22, %v2262_v3  ;;  %v2047_v63 = vadd.f32 %v3022_v47, %v3020_v48 }
 0x463   : > { %v3024_v8 = vpop.eup %3023  ;;  %v2115_v35 = vmul.f32 %v3022_v47, %v3798_v4  ;;  %v1964_v37 = vmul.f32 1.442695, %v1910_v25  ;;  %v1966_v46 = vmul.f32 1.442695, %v1911_v27  ;;  %v2325_v17 = vsel %vm2324_vm8, %v2323_v45, %v2322_v40 }
 0x464   : > { %v4290_v61 = vmul.f32 %v3024_v8, %v2239_v42  ;;  %v1866_v0 = vmax.f32 %v1864_v60, %v1865_v2  ;;  %v2326_v44 = vrot.slane %v2285_v34, 2  ;;  %v2048_v56 = vrot.slane %v2047_v63, 4 }
 0x465   : > { %v2191_v10 = vadd.f32 %v2115_v35, %v2114_v36  ;;  %3033 = vpow2.f32 %v1964_v37  ;;  %v2183_v33 = vadd.f32 %v2182_v41, %v2181_v43  ;;  %v2190_v23 = vadd.f32 %v2189_v50, %v2188_v39 }
 0x466   : > { %3035 = vpow2.f32 %v1966_v46  ;;  %v1912_v11 = vsub.f32 %v4242_v6, %v1866_v0  ;;  %v1913_v15 = vsub.f32 %v4236_v24, %v1866_v0  ;;  %v2049_v1 = vadd.f32 %v2048_v56, %v2047_v63 }
 0x467   : > { %v2192_v19 = vrot.slane %v2191_v10, 4  ;;  %v2328_v53 = vsel %vm2327_vm9, %v2326_v44, %v2325_v17 }
 0x468   : > { %v3026_v59 = vpop.eup %3025  ;;  %v1968_v14 = vmul.f32 1.442695, %v1912_v11  ;;  %v1970_v7 = vmul.f32 1.442695, %v1913_v15  ;;  %v2050_v32 = vrot.slane %v2049_v1, 2 }
 0x469   : > { %v2263_v26 = vmul.f32 %v3026_v59, %v2183_v33  ;;  %v2193_v58 = vadd.f32 %v2192_v19, %v2191_v10 }
 0x46a   : > { %v3028_v12 = vpop.eup %3027  ;;  %3037 = vpow2.f32 %v1968_v14  ;;  %v2051_v52 = vadd.f32 %v2050_v32, %v2049_v1 }
 0x46b   : > { %v2286_v29 = vadd.f32 %v4112_v22, %v2263_v26  ;;  %v3030_v51 = vpop.eup %3029  ;;  %v2264_v6 = vmul.f32 %v3028_v12, %v2190_v23  ;;  %3039 = vpow2.f32 %v1970_v7  ;;  %v2194_v49 = vrot.slane %v2193_v58, 2 }
 0x46c   : > { %v3032_v24 = vpop.eup %3031  ;;  %v2116_v43 = vmul.f32 %v3030_v51, %v3788_v31  ;;  %v2052_v18 = vrot.slane %v2051_v52, 1 }
 0x46d   : > { %v2329_v9 = vrot.slane %v2286_v29, 1  ;;  %v2054_v38 = vadd.f32 %v3032_v24, %v3030_v51  ;;  %v2117_v5 = vmul.f32 %v3032_v24, %v3798_v4  ;;  %v2195_v16 = vadd.f32 %v2194_v49, %v2193_v58 }
 0x46e   : > { %v2053_v57 = vadd.f32 %v2052_v18, %v2051_v52  ;;  %v2287_v32 = vadd.f32 %v4112_v22, %v2264_v6 }
 0x46f   : > { %v2331_v42 = vsel %vm2330_vm10, %v2329_v9, %v2328_v53  ;;  %v3034_v28 = vpop.eup %3033  ;;  %v2055_v54 = vrot.slane %v2054_v38, 4  ;;  %v2198_v39 = vadd.f32 %v2117_v5, %v2116_v43  ;;  %v2196_v2 = vrot.slane %v2195_v16, 1 }
 0x470   : > { %2348 = vst [vmem:[%s4301_s21] sm:$0xff] %v2331_v42  ;;  %v3036_v30 = vpop.eup %3035  ;;  %v2118_v13 = vmul.f32 %v3034_v28, %v3788_v31  ;;  %3041 = vrcp.f32 %v2053_v57 }
 0x471   : > { %v2056_v20 = vadd.f32 %v2055_v54, %v2054_v38  ;;  %v2061_v3 = vadd.f32 %v3036_v30, %v3034_v28  ;;  %v2199_v60 = vrot.slane %v2198_v39, 4  ;;  %v2119_v21 = vmul.f32 %v3036_v30, %v3798_v4 }
 0x472   : > { %v2197_v33 = vadd.f32 %v2196_v2, %v2195_v16 }
 0x473   : > { %v2057_v48 = vrot.slane %v2056_v20, 2  ;;  %v2062_v41 = vrot.slane %v2061_v3, 4  ;;  %v2200_v45 = vadd.f32 %v2199_v60, %v2198_v39  ;;  %v2205_v36 = vadd.f32 %v2119_v21, %v2118_v13 }
 0x474   : > { %v3038_v40 = vpop.eup %3037  ;;  %v2292_v21 = vadd.f32 %v4112_v22, %v4178_v55 }
 0x475   : > { %v3040_v25 = vpop.eup %3039  ;;  %v2058_v27 = vadd.f32 %v2057_v48, %v2056_v20  ;;  %v2063_v47 = vadd.f32 %v2062_v41, %v2061_v3  ;;  %v2120_v50 = vmul.f32 %v3038_v40, %v3788_v31  ;;  %v2206_v34 = vrot.slane %v2205_v36, 4 }
 0x476   : > { %v2068_v8 = vadd.f32 %v3040_v25, %v3038_v40  ;;  %v2121_v63 = vmul.f32 %v3040_v25, %v3798_v4  ;;  %v2201_v46 = vrot.slane %v2200_v45, 2  ;;  %v2293_v40 = vadd.f32 %v4112_v22, %v4262_v62 }
 0x477   : > { %v2059_v35 = vrot.slane %v2058_v27, 1  ;;  %v2064_v37 = vrot.slane %v2063_v47, 2  ;;  %v2207_v0 = vadd.f32 %v2206_v34, %v2205_v36  ;;  %v2340_v25 = vrot.slane %v2292_v21, 3 }
 0x478   : > { %v2069_v17 = vrot.slane %v2068_v8, 4  ;;  %v2212_v44 = vadd.f32 %v2121_v63, %v2120_v50  ;;  %v2202_v19 = vadd.f32 %v2201_v46, %v2200_v45  ;;  %v2294_v45 = vadd.f32 %v4112_v22, %v4290_v61 }
 0x479   : > { %v2060_v56 = vadd.f32 %v2059_v35, %v2058_v27  ;;  %v2065_v10 = vadd.f32 %v2064_v37, %v2063_v47  ;;  %v2208_v53 = vrot.slane %v2207_v0, 2  ;;  %v2342_v55 = vrot.slane %v2293_v40, 2 }
 0x47a   : > { %v2070_v11 = vadd.f32 %v2069_v17, %v2068_v8  ;;  %v2213_v15 = vrot.slane %v2212_v44, 4  ;;  %v3042_v59 = vpop.eup %3041  ;;  %v2203_v58 = vrot.slane %v2202_v19, 1  ;;  %v2344_v50 = vrot.slane %v2294_v45, 1 }
 0x47b   : > { %3043 = vrcp.f32 %v2060_v56  ;;  %v2066_v1 = vrot.slane %v2065_v10, 1  ;;  %v2265_v31 = vmul.f32 %v3042_v59, %v2197_v33  ;;  %v2209_v29 = vadd.f32 %v2208_v53, %v2207_v0 }
 0x47c   : > { %v2071_v26 = vrot.slane %v2070_v11, 2  ;;  %v2214_v4 = vadd.f32 %v2213_v15, %v2212_v44  ;;  %v2204_v9 = vadd.f32 %v2203_v58, %v2202_v19 }
 0x47d   : > { %v2067_v14 = vadd.f32 %v2066_v1, %v2065_v10  ;;  %v2288_v7 = vadd.f32 %v4112_v22, %v2265_v31  ;;  %v2210_v18 = vrot.slane %v2209_v29, 1 }
 0x47e   : > { %v2072_v23 = vadd.f32 %v2071_v26, %v2070_v11  ;;  %v2215_v52 = vrot.slane %v2214_v4, 2 }
 0x47f   : > { %3045 = vrcp.f32 %v2067_v14  ;;  %v2332_v12 = vrot.slane %v2288_v7, 7  ;;  %v2211_v28 = vadd.f32 %v2210_v18, %v2209_v29 }
 0x480   : > { %v2073_v51 = vrot.slane %v2072_v23, 1  ;;  %v2216_v49 = vadd.f32 %v2215_v52, %v2214_v4 }
 0x481   : > { %v2333_v43 = vsel %vm2312_vm4, %v2332_v12, %v2287_v32 }
 0x482   : > { %v2074_v24 = vadd.f32 %v2073_v51, %v2072_v23  ;;  %v2217_v6 = vrot.slane %v2216_v49, 1 }
 0x484   : > { %3047 = vrcp.f32 %v2074_v24  ;;  %v2218_v20 = vadd.f32 %v2217_v6, %v2216_v49 }
 0x485   : > { %v3044_v38 = vpop.eup %3043 }
 0x486   : > { %v2266_v5 = vmul.f32 %v3044_v38, %v2204_v9 }
 0x488   : > { %v2289_v42 = vadd.f32 %v4112_v22, %v2266_v5 }
 0x489   : > { %v3046_v57 = vpop.eup %3045 }
 0x48a   : > { %v2334_v54 = vrot.slane %v2289_v42, 6  ;;  %v2267_v30 = vmul.f32 %v3046_v57, %v2211_v28 }
 0x48c   : > { %v2290_v39 = vadd.f32 %v4112_v22, %v2267_v30  ;;  %v2335_v13 = vsel %vm2315_vm5, %v2334_v54, %v2333_v43 }
 0x48e   : > { %v3048_v3 = vpop.eup %3047  ;;  %v2336_v16 = vrot.slane %v2290_v39, 5 }
 0x48f   : > { %v2268_v60 = vmul.f32 %v3048_v3, %v2218_v20 }
 0x490   : > { %v2337_v48 = vsel %vm2318_vm6, %v2336_v16, %v2335_v13 }
 0x491   : > { %v2291_v41 = vadd.f32 %v4112_v22, %v2268_v60 }
 0x493   : > { %v2338_v36 = vrot.slane %v2291_v41, 4 }
 0x495   : > { %v2339_v27 = vsel %vm2321_vm7, %v2338_v36, %v2337_v48 }
 0x496   : > { %v2341_v47 = vsel %vm2324_vm8, %v2340_v25, %v2339_v27 }
 0x497   : > { %v2343_v22 = vsel %vm2327_vm9, %v2342_v55, %v2341_v47 }
 0x498   : > { %v2345_v62 = vsel %vm2330_vm10, %v2344_v50, %v2343_v22 }
 0x499   : > { %2349 = vst [vmem:[%s4301_s21 + $0x8] sm:$0xff] %v2345_v62 }
 0x49a   : > { %3148 = shalt.err (!%p3145_p13)
}
 0x49b   : > { %s3149_s26 = scalar_lea.hbm %s4329_s23, 256  ;;  %s3153_s25 = scalar_lea.hbm %s4388_s10, 512 }
 0x49c   : > { %p3150_p6 = scmp.ne.s32.totalorder %s4329_s23, %s3149_s26  ;;  %p3154_p5 = scmp.lt.u32.totalorder %s4329_s23, %s4388_s10 }
 0x49d   : > { %p3155_p11 = scmp.lt.u32.totalorder %s3153_s25, %s3149_s26  ;;  %p3157_p0 = scmp.lt.u32.totalorder %s3149_s26, %s4329_s23 }
 0x49e   : > { %p3151_p10 = pnand %p3150_p6, %p4410_p2 }
 0x49f   : > { %p3156_p8 = por %p3155_p11, %p3154_p5 }
 0x4a0   : > { %p3152_p4 = pneg %p3151_p10 }
 0x4a1   : > { %p3158_p3 = por %p3157_p0, %p3156_p8 }
 0x4a3   : > { %p3159_p7 = pnand %p3158_p3, %p3152_p4 }
 0x4a5   : > { %3162 = shalt.err (!%p3159_p7)
}
 0x4a6   : > { %s3217_s27 = smov 128   ;;  %s3218_s22 = smov 8  }
 0x4a7   : > { %2872 = dma.vmem_to_hbm [thread:$0]  (%p4410_p2), %s4331_s13, 256, %s4329_s23, %s2351_s17, %s3217_s27, %s3217_s27, %s3218_s22  }
 0x4a8 PF: > { %s4411_s12 = sld [smem:[#allocation12_spill]]  ;;  %s4412_s18 = sld [smem:[#allocation13_spill]] }
 0x4a9   : > { %p4414_p12 = scmp.ge.s32.totalorder %s3205_s16, 2 }
 0x4ae   : > { %s2379_s19 = sand.u32 1, %s4411_s12   ;;  %p4413_p9 = scmp.ne.s32.totalorder %s4412_s18, 0 }
 0x4af   : > { %s2380_s26 = scalar_lea.sflag [#allocation4], %s2379_s19 }
 0x4b0   : > { %p2886_p1 = pnand %p4414_p12, %p4413_p9 }
 0x4b2   : > { %3188 = dma.done.wait (!%p2886_p1), %s2380_s26, 256  }
 0x4b3   : > { %3190 = vsyncadd (!%p2886_p1), %s2380_s26, 4294967040  ;;  %p24_p13 = scmp.ge.s32.totalorder %s3390_s24, 4   ;;  %s4415_s13 = smov %s3197_s14 }
 0x4b4   : > { %s4416_s14 = smov %s3201_s15  ;;  %s4417_s15 = smov %s3406_s11 }
 0x4b5   : > { %s4418_s16 = smov %s3390_s24  ;;  %26 = sbr.rel (!%p24_p13) target bundleno = 6 (0x6), region = 116 }
 0x4bc   :  { %2385 = vsyncpa [#allocation3], 1 }
 0x4bd   :  { %2387 = vsyncpa [#allocation3 + $0x1], 1 }
 0x4be   :  { %2388 = vsyncpa [#allocation6], 1 }
 0x4bf   :  { %2389 = vsyncpa [#allocation4], 1 }
 0x4c0   :  { %2391 = vsyncpa [#allocation4 + $0x1], 1 }

</bundles_post_ra>
